<compile_context>
chip_gen: v7x
topology: tpu7x:2x2x1
jax: 0.10.0
libtpu: 0.0.40
codegen_flags: <defaults>
</compile_context>

<pallas_src>
import jax
import jax.numpy as jnp
from jax import lax
from jax.experimental import pallas as pl
from jax.experimental.pallas import tpu as pltpu


def _make_kernel(H, W, stride, identity):
    HW = H * W
    # positive-shift representatives of the 8 off-centre depthwise taps; each
    # opposite tap reuses the same pair of lane rotations.
    reps = ((0, 1), (1, -1), (1, 0), (1, 1))

    def h_swish(v):
        return v * (jnp.clip(v + 3.0, 0.0, 6.0) * (1.0 / 6.0))

    def kernel(x_ref, w_exp_ref, b_hid_ref, w_dw_ref,
               w_ca1_ref, b_ca1_ref, w_ca2_ref, w_ca3_ref,
               w_proj_ref, b_proj_ref, dw_mask_ref, dw_idx_ref,
               ph_ref, pw_ref, eh_ref, ew_ref, *rest):
        if stride == 2:
            d_sel_ref, out_ref = rest
        else:
            (out_ref,) = rest

        x = x_ref[0]                               # (Cin, H*W), lane-dense
        b_hid = b_hid_ref[...]                     # (hid, 4): bn1/bn2/ca2/ca3 shifts

        # ---- expand 1x1 conv (BN1 folded into weights) + ReLU6 ----
        y = jnp.dot(w_exp_ref[...], x, preferred_element_type=jnp.float32)
        y = jnp.clip(y + b_hid[:, 0:1], 0.0, 6.0)            # (hid, H*W)

        # ---- depthwise 3x3 conv (BN2 scale folded into weights) + ReLU6 ----
        w_dw = w_dw_ref[...]                       # (hid, 9)
        pos = dw_idx_ref[0:1, :]                   # (1, H*W) int32 flat positions
        acc = y * w_dw[:, 4:5]                     # centre tap (dy=0, dx=0)
        for t, (dy, dx) in enumerate(reps):
            s = dy * W + dx                        # 1 <= s <= W+1
            rolled_a = pltpu.roll(y, HW - s, axis=1)
            rolled_b = pltpu.roll(y, s, axis=1)
            src_a = pltpu.roll(pos, HW - s, axis=1)
            # dw_idx row t+1 holds (pos + s) % HW; checking the rolled source
            # indices makes the +s / -s tap selection independent of the
            # rotate-direction convention of the hardware rotate.
            a_is_plus = src_a == dw_idx_ref[t + 1:t + 2, :]
            tap_p = jnp.where(a_is_plus, rolled_a, rolled_b)   # y[f + s]
            tap_m = jnp.where(a_is_plus, rolled_b, rolled_a)   # y[f - s]
            kp = 3 * (dy + 1) + (dx + 1)
            km = 8 - kp
            acc = acc + tap_p * dw_mask_ref[kp:kp + 1, :] * w_dw[:, kp:kp + 1]
            acc = acc + tap_m * dw_mask_ref[km:km + 1, :] * w_dw[:, km:km + 1]
        feat = jnp.clip(acc + b_hid[:, 1:2], 0.0, 6.0)        # (hid, H*W)

        if stride == 2:
            # constant 0/1 selection matmul: keep every stride-th row/column
            feat = jnp.dot(feat, d_sel_ref[...],
                           preferred_element_type=jnp.float32)  # (hid, Ho*Wo)

        # ---- CoordAtt(hid, hid): pooling & broadcast as MXU matmuls ----
        pool_h = jnp.dot(feat, ph_ref[...], preferred_element_type=jnp.float32)  # (hid, Ho)
        pool_w = jnp.dot(feat, pw_ref[...], preferred_element_type=jnp.float32)  # (hid, Wo)

        y_h = h_swish(jnp.dot(w_ca1_ref[...], pool_h,
                              preferred_element_type=jnp.float32) + b_ca1_ref[...])
        y_w = h_swish(jnp.dot(w_ca1_ref[...], pool_w,
                              preferred_element_type=jnp.float32) + b_ca1_ref[...])

        a_h = jax.nn.sigmoid(jnp.dot(w_ca2_ref[...], y_h,
                                     preferred_element_type=jnp.float32)
                             + b_hid[:, 2:3])                 # (hid, Ho)
        a_w = jax.nn.sigmoid(jnp.dot(w_ca3_ref[...], y_w,
                                     preferred_element_type=jnp.float32)
                             + b_hid[:, 3:4])                 # (hid, Wo)

        att = (feat
               * jnp.dot(a_h, eh_ref[...], preferred_element_type=jnp.float32)
               * jnp.dot(a_w, ew_ref[...], preferred_element_type=jnp.float32))

        # ---- project 1x1 conv (BN3 folded) [+ residual] ----
        out = jnp.dot(w_proj_ref[...], att,
                      preferred_element_type=jnp.float32) + b_proj_ref[...]
        if identity:
            out = out + x
        out_ref[0] = out.astype(out_ref.dtype)

    return kernel


def _fold_params(p, eps=1e-5):
    """Fold inference-form BatchNorms and conv biases into matmul weights."""
    def fold(name):
        sc = p[name + "_g"] / jnp.sqrt(p[name + "_v"] + eps)
        return sc, p[name + "_b"] - p[name + "_m"] * sc

    sc1, sh1 = fold("bn1")
    sc2, sh2 = fold("bn2")
    scc, shc = fold("bnca")
    sc3, sh3 = fold("bn3")
    hid = p["w_exp"].shape[0]
    return dict(
        w_exp=sc1[:, None] * p["w_exp"],                       # (hid, Cin)
        w_dw=sc2[:, None] * p["w_dw"].reshape(hid, 9),         # (hid, 9)
        w_ca1=scc[:, None] * p["w_ca1"],                       # (mip, hid)
        b_ca1=(scc * p["b_ca1"] + shc)[:, None],               # (mip, 1)
        w_ca2=p["w_ca2"], w_ca3=p["w_ca3"],                    # (hid, mip)
        w_proj=sc3[:, None] * p["w_proj"],                     # (oup, hid)
        b_proj=sh3[:, None],                                   # (oup, 1)
        b_hid=jnp.stack([sh1, sh2, p["b_ca2"], p["b_ca3"]], axis=1),  # (hid, 4)
    )


def inverted_residual(x, params, *, stride, expand_ratio, eps=1e-5):
    """Forward pass of InvertedResidual. x: (N, Cin, H, W) float32."""
    assert stride in (1, 2)
    # TODO(synk): expand_ratio == 1 branch (no expansion conv / CoordAtt) not implemented.
    assert expand_ratio != 1, "expand_ratio == 1 branch not implemented"

    N, Cin, H, W = x.shape
    hid = params["w_exp"].shape[0]
    mip = params["w_ca1"].shape[0]
    oup = params["w_proj"].shape[0]
    identity = (stride == 1 and Cin == oup)

    HW = H * W
    Ho = (H - 1) // stride + 1
    Wo = (W - 1) // stride + 1
    So = Ho * Wo

    fp = _fold_params(params, eps=eps)

    # --- small host-built constants ---
    f_in = jnp.arange(HW, dtype=jnp.int32)
    ri, ci = f_in // W, f_in % W
    # boundary masks (per 3x3 tap) + rolled-source targets for the depthwise conv
    masks = []
    for dy in (-1, 0, 1):
        for dx in (-1, 0, 1):
            masks.append(((ri + dy >= 0) & (ri + dy < H) &
                          (ci + dx >= 0) & (ci + dx < W)).astype(jnp.float32))
    dw_mask = jnp.stack(masks)                                            # (9, HW)
    shifts = (1, W - 1, W, W + 1)
    dw_idx = jnp.stack([f_in] + [(f_in + s) % HW for s in shifts])        # (5, HW)
    dw_idx = dw_idx.astype(jnp.int32)

    # CoordAtt pooling / broadcast matrices on the (Ho, Wo) output grid
    f_out = jnp.arange(So, dtype=jnp.int32)
    io, jo = f_out // Wo, f_out % Wo
    ph = (io[:, None] == jnp.arange(Ho)[None, :]).astype(jnp.float32) / Wo  # (So, Ho)
    pw = (jo[:, None] == jnp.arange(Wo)[None, :]).astype(jnp.float32) / Ho  # (So, Wo)
    eh = (jnp.arange(Ho)[:, None] == io[None, :]).astype(jnp.float32)       # (Ho, So)
    ew = (jnp.arange(Wo)[:, None] == jo[None, :]).astype(jnp.float32)       # (Wo, So)

    operands = [x.reshape(N, Cin, HW),
                fp["w_exp"], fp["b_hid"], fp["w_dw"],
                fp["w_ca1"], fp["b_ca1"], fp["w_ca2"], fp["w_ca3"],
                fp["w_proj"], fp["b_proj"],
                dw_mask, dw_idx, ph, pw, eh, ew]
    if stride == 2:
        d_sel = ((ri[:, None] == (io * stride)[None, :]) &
                 (ci[:, None] == (jo * stride)[None, :])).astype(jnp.float32)  # (HW, So)
        operands.append(d_sel)

    def full_spec(a):
        return pl.BlockSpec(a.shape, lambda n, nd=a.ndim: (0,) * nd)

    in_specs = ([pl.BlockSpec((1, Cin, HW), lambda n: (n, 0, 0))]
                + [full_spec(a) for a in operands[1:]])

    # advisory cost estimate: this kernel is HBM-bandwidth bound on x / out
    flops = 2 * N * (HW * hid * (Cin + 9)
                     + So * hid * (oup + 2 * (Ho + Wo))
                     + 2 * (Ho + Wo) * mip * hid
                     + (HW * hid * So if stride == 2 else 0))
    transcendentals = N * hid * (Ho + Wo)
    bytes_accessed = 4 * (N * Cin * HW + N * oup * So
                          + sum(int(a.size) for a in operands[1:]))

    out_flat = pl.pallas_call(
        _make_kernel(H, W, stride, identity),
        out_shape=jax.ShapeDtypeStruct((N, oup, So), x.dtype),
        grid_spec=pltpu.PrefetchScalarGridSpec(
            num_scalar_prefetch=0,
            grid=(N,),
            in_specs=in_specs,
            out_specs=pl.BlockSpec((1, oup, So), lambda n: (n, 0, 0)),
        ),
        compiler_params=pltpu.CompilerParams(
            dimension_semantics=("parallel",)),
        cost_estimate=pl.CostEstimate(
            flops=int(flops),
            transcendentals=int(transcendentals),
            bytes_accessed=int(bytes_accessed)),
    )(*operands)
    return out_flat.reshape(N, oup, Ho, Wo)


def init_params(key, inp, oup, expand_ratio, groups=32):
    """Raw (PyTorch-style) parameters of InvertedResidual(inp, oup, stride, expand_ratio)."""
    hid = int(round(inp * expand_ratio))
    mip = max(8, hid // groups)
    keys = iter(jax.random.split(key, 32))

    def normal(shape, scale):
        return scale * jax.random.normal(next(keys), shape, jnp.float32)

    p = dict(
        w_exp=normal((hid, inp), 0.4),       # 1x1 expand conv, bias=False
        w_dw=normal((hid, 1, 3, 3), 0.4),    # depthwise 3x3 conv, bias=False
        w_ca1=normal((mip, hid), 0.4),       # CoordAtt conv1 (+bias)
        b_ca1=normal((mip,), 0.1),
        w_ca2=normal((hid, mip), 0.4),       # CoordAtt conv2 (+bias)
        b_ca2=normal((hid,), 0.1),
        w_ca3=normal((hid, mip), 0.4),       # CoordAtt conv3 (+bias)
        b_ca3=normal((hid,), 0.1),
        w_proj=normal((oup, hid), 0.4),      # 1x1 project conv, bias=False
    )
    # BatchNorm weights + running stats (inference form, deterministic)
    for name, c in (("bn1", hid), ("bn2", hid), ("bnca", mip), ("bn3", oup)):
        p[name + "_g"] = 1.0 + normal((c,), 0.1)
        p[name + "_b"] = normal((c,), 0.1)
        p[name + "_m"] = normal((c,), 0.1)
        p[name + "_v"] = 1.0 + 0.1 * jax.random.uniform(next(keys), (c,), jnp.float32)
    return p


def inverted_residual_reference(x, p, *, stride, eps=1e-5):
    """Pure-JAX reference mirroring the PyTorch forward (inference-mode BN)."""
    N, Cin, H, W = x.shape
    hid = p["w_exp"].shape[0]
    oup = p["w_proj"].shape[0]
    identity = (stride == 1 and Cin == oup)
    hp = lax.Precision.HIGHEST

    def bn(v, name):
        sh = (1, -1) + (1,) * (v.ndim - 2)
        sc = p[name + "_g"] / jnp.sqrt(p[name + "_v"] + eps)
        return (v - p[name + "_m"].reshape(sh)) * sc.reshape(sh) + p[name + "_b"].reshape(sh)

    def h_swish(v):
        return v * jnp.clip(v + 3.0, 0.0, 6.0) / 6.0

    # expand 1x1 + BN + ReLU6
    y = jnp.einsum("oc,nchw->nohw", p["w_exp"], x, precision=hp)
    y = jnp.clip(bn(y, "bn1"), 0.0, 6.0)
    # depthwise 3x3 + BN + ReLU6
    y = lax.conv_general_dilated(
        y, p["w_dw"], window_strides=(stride, stride), padding=((1, 1), (1, 1)),
        dimension_numbers=("NCHW", "OIHW", "NCHW"),
        feature_group_count=hid, precision=hp)
    y = jnp.clip(bn(y, "bn2"), 0.0, 6.0)
    # CoordAtt(hid, hid)
    Ho, Wo = y.shape[2], y.shape[3]
    th = jnp.mean(y, axis=3)                         # (N, hid, Ho)
    tw = jnp.mean(y, axis=2)                         # (N, hid, Wo)
    t = jnp.concatenate([th, tw], axis=2)
    t = jnp.einsum("mc,ncs->nms", p["w_ca1"], t, precision=hp) + p["b_ca1"][None, :, None]
    t = h_swish(bn(t, "bnca"))
    th, tw = t[:, :, :Ho], t[:, :, Ho:]
    ah = jax.nn.sigmoid(jnp.einsum("om,nms->nos", p["w_ca2"], th, precision=hp)
                        + p["b_ca2"][None, :, None])
    aw = jax.nn.sigmoid(jnp.einsum("om,nms->nos", p["w_ca3"], tw, precision=hp)
                        + p["b_ca3"][None, :, None])
    y = y * ah[:, :, :, None] * aw[:, :, None, :]
    # project 1x1 + BN (+ residual)
    y = jnp.einsum("oc,nchw->nohw", p["w_proj"], y, precision=hp)
    y = bn(y, "bn3")
    if identity:
        y = y + x
    return y


if __name__ == "__main__":
    key = jax.random.PRNGKey(0)
    k_x, k_p = jax.random.split(key)

    # small shapes: inp == oup and stride == 1 so the residual branch is used;
    # expand_ratio = 4 -> hidden_dim = 16, CoordAtt mip = 8.
    N, C, H, W = 2, 4, 16, 16
    stride, expand_ratio = 1, 4

    x = jax.random.normal(k_x, (N, C, H, W), jnp.float32)
    params = init_params(k_p, inp=C, oup=C, expand_ratio=expand_ratio)

    out = inverted_residual(x, params, stride=stride, expand_ratio=expand_ratio)
    out = jax.block_until_ready(out)

    ref = inverted_residual_reference(x, params, stride=stride)
    assert out.shape == ref.shape == (N, C, H, W)
    err = float(jnp.max(jnp.abs(out - ref)))
    assert jnp.allclose(out, ref, atol=5e-4, rtol=5e-4), f"mismatch vs reference: {err}"

    print("KERNEL_OK")
</pallas_src>

<mosaic_0001>
module attributes {stable_mosaic.version = 11 : i64} {
  func.func @kernel(%arg0: i32, %arg1: memref<1x4x256xf32, #tpu.memory_space<vmem>>, %arg2: memref<16x4xf32, #tpu.memory_space<vmem>>, %arg3: memref<16x4xf32, #tpu.memory_space<vmem>>, %arg4: memref<16x9xf32, #tpu.memory_space<vmem>>, %arg5: memref<8x16xf32, #tpu.memory_space<vmem>>, %arg6: memref<8x1xf32, #tpu.memory_space<vmem>>, %arg7: memref<16x8xf32, #tpu.memory_space<vmem>>, %arg8: memref<16x8xf32, #tpu.memory_space<vmem>>, %arg9: memref<4x16xf32, #tpu.memory_space<vmem>>, %arg10: memref<4x1xf32, #tpu.memory_space<vmem>>, %arg11: memref<9x256xf32, #tpu.memory_space<vmem>>, %arg12: memref<5x256xi32, #tpu.memory_space<vmem>>, %arg13: memref<256x16xf32, #tpu.memory_space<vmem>>, %arg14: memref<256x16xf32, #tpu.memory_space<vmem>>, %arg15: memref<16x256xf32, #tpu.memory_space<vmem>>, %arg16: memref<16x256xf32, #tpu.memory_space<vmem>>, %arg17: memref<1x4x256xf32, #tpu.memory_space<vmem>>) attributes {dimension_semantics = [#tpu.dimension_semantics<parallel>], iteration_bounds = array<i64: 2>, scalar_prefetch = 0 : i64, scratch_operands = 0 : i64, tpu.core_type = #tpu.core_type<tc>, window_params = [{transform_indices = @transform_0, window_bounds = array<i64: 1, 4, 256>}, {pipeline_mode = #tpu.pipeline_mode<synchronous>, transform_indices = @transform_1, window_bounds = array<i64: 16, 4>}, {pipeline_mode = #tpu.pipeline_mode<synchronous>, transform_indices = @transform_2, window_bounds = array<i64: 16, 4>}, {pipeline_mode = #tpu.pipeline_mode<synchronous>, transform_indices = @transform_3, window_bounds = array<i64: 16, 9>}, {pipeline_mode = #tpu.pipeline_mode<synchronous>, transform_indices = @transform_4, window_bounds = array<i64: 8, 16>}, {pipeline_mode = #tpu.pipeline_mode<synchronous>, transform_indices = @transform_5, window_bounds = array<i64: 8, 1>}, {pipeline_mode = #tpu.pipeline_mode<synchronous>, transform_indices = @transform_6, window_bounds = array<i64: 16, 8>}, {pipeline_mode = #tpu.pipeline_mode<synchronous>, transform_indices = @transform_7, window_bounds = array<i64: 16, 8>}, {pipeline_mode = #tpu.pipeline_mode<synchronous>, transform_indices = @transform_8, window_bounds = array<i64: 4, 16>}, {pipeline_mode = #tpu.pipeline_mode<synchronous>, transform_indices = @transform_9, window_bounds = array<i64: 4, 1>}, {pipeline_mode = #tpu.pipeline_mode<synchronous>, transform_indices = @transform_10, window_bounds = array<i64: 9, 256>}, {pipeline_mode = #tpu.pipeline_mode<synchronous>, transform_indices = @transform_11, window_bounds = array<i64: 5, 256>}, {pipeline_mode = #tpu.pipeline_mode<synchronous>, transform_indices = @transform_12, window_bounds = array<i64: 256, 16>}, {pipeline_mode = #tpu.pipeline_mode<synchronous>, transform_indices = @transform_13, window_bounds = array<i64: 256, 16>}, {pipeline_mode = #tpu.pipeline_mode<synchronous>, transform_indices = @transform_14, window_bounds = array<i64: 16, 256>}, {pipeline_mode = #tpu.pipeline_mode<synchronous>, transform_indices = @transform_15, window_bounds = array<i64: 16, 256>}, {transform_indices = @transform_16, window_bounds = array<i64: 1, 4, 256>}]} {
    %c0 = arith.constant 0 : index
    %c0_0 = arith.constant 0 : index
    %c0_1 = arith.constant 0 : index
    %0 = vector.load %arg1[%c0, %c0_0, %c0_1] : memref<1x4x256xf32, #tpu.memory_space<vmem>>, vector<1x4x256xf32>
    %1 = vector.shape_cast %0 : vector<1x4x256xf32> to vector<4x256xf32>
    %c0_2 = arith.constant 0 : index
    %c0_3 = arith.constant 0 : index
    %2 = vector.load %arg3[%c0_2, %c0_3] : memref<16x4xf32, #tpu.memory_space<vmem>>, vector<16x4xf32>
    %c0_4 = arith.constant 0 : index
    %c0_5 = arith.constant 0 : index
    %3 = vector.load %arg2[%c0_4, %c0_5] : memref<16x4xf32, #tpu.memory_space<vmem>>, vector<16x4xf32>
    %cst = arith.constant dense<0.000000e+00> : vector<16x256xf32>
    %4 = tpu.matmul %3, %1, %cst {dimension_numbers = #tpu.dot_dimension_numbers<[1], [0], [0], [1], [0, 0, 1, 1], [], []>} : vector<16x4xf32>, vector<4x256xf32>, vector<16x256xf32> -> vector<16x256xf32>
    %5 = vector.extract_strided_slice %2 {offsets = [0, 0], sizes = [16, 1], strides = [1, 1]} : vector<16x4xf32> to vector<16x1xf32>
    %6 = vector.broadcast %5 : vector<16x1xf32> to vector<16x256xf32>
    %7 = arith.addf %4, %6 : vector<16x256xf32>
    %cst_6 = arith.constant 0.000000e+00 : f32
    %cst_7 = arith.constant 6.000000e+00 : f32
    %8 = vector.broadcast %cst_6 : f32 to vector<16x256xf32>
    %9 = arith.maximumf %8, %7 : vector<16x256xf32>
    %10 = vector.broadcast %cst_7 : f32 to vector<16x256xf32>
    %11 = arith.minimumf %10, %9 : vector<16x256xf32>
    %c0_8 = arith.constant 0 : index
    %c0_9 = arith.constant 0 : index
    %12 = vector.load %arg4[%c0_8, %c0_9] : memref<16x9xf32, #tpu.memory_space<vmem>>, vector<16x9xf32>
    %c0_10 = arith.constant 0 : index
    %c0_11 = arith.constant 0 : index
    %13 = vector.load %arg12[%c0_10, %c0_11] : memref<5x256xi32, #tpu.memory_space<vmem>>, vector<1x256xi32>
    %14 = vector.extract_strided_slice %12 {offsets = [0, 4], sizes = [16, 1], strides = [1, 1]} : vector<16x9xf32> to vector<16x1xf32>
    %15 = vector.broadcast %14 : vector<16x1xf32> to vector<16x256xf32>
    %16 = arith.mulf %11, %15 : vector<16x256xf32>
    %c255_i32 = arith.constant 255 : i32
    %17 = tpu.dynamic_rotate %11 by %c255_i32 dim 1 : vector<16x256xf32>, i32 -> vector<16x256xf32>
    %c1_i32 = arith.constant 1 : i32
    %18 = tpu.dynamic_rotate %11 by %c1_i32 dim 1 : vector<16x256xf32>, i32 -> vector<16x256xf32>
    %c255_i32_12 = arith.constant 255 : i32
    %19 = tpu.dynamic_rotate %13 by %c255_i32_12 dim 1 : vector<1x256xi32>, i32 -> vector<1x256xi32>
    %c1 = arith.constant 1 : index
    %c0_13 = arith.constant 0 : index
    %20 = vector.load %arg12[%c1, %c0_13] : memref<5x256xi32, #tpu.memory_space<vmem>>, vector<1x256xi32>
    %21 = arith.cmpi eq, %19, %20 : vector<1x256xi32>
    %22 = vector.shape_cast %21 : vector<1x256xi1> to vector<1x256xi1>
    %23 = vector.broadcast %22 : vector<1x256xi1> to vector<16x256xi1>
    %24 = arith.select %23, %17, %18 : vector<16x256xi1>, vector<16x256xf32>
    %25 = vector.shape_cast %21 : vector<1x256xi1> to vector<1x256xi1>
    %26 = vector.broadcast %25 : vector<1x256xi1> to vector<16x256xi1>
    %27 = arith.select %26, %18, %17 : vector<16x256xi1>, vector<16x256xf32>
    %c5 = arith.constant 5 : index
    %c0_14 = arith.constant 0 : index
    %28 = vector.load %arg11[%c5, %c0_14] : memref<9x256xf32, #tpu.memory_space<vmem>>, vector<1x256xf32>
    %29 = vector.broadcast %28 : vector<1x256xf32> to vector<16x256xf32>
    %30 = arith.mulf %24, %29 : vector<16x256xf32>
    %31 = vector.extract_strided_slice %12 {offsets = [0, 5], sizes = [16, 1], strides = [1, 1]} : vector<16x9xf32> to vector<16x1xf32>
    %32 = vector.broadcast %31 : vector<16x1xf32> to vector<16x256xf32>
    %33 = arith.mulf %30, %32 : vector<16x256xf32>
    %34 = arith.addf %16, %33 : vector<16x256xf32>
    %c3 = arith.constant 3 : index
    %c0_15 = arith.constant 0 : index
    %35 = vector.load %arg11[%c3, %c0_15] : memref<9x256xf32, #tpu.memory_space<vmem>>, vector<1x256xf32>
    %36 = vector.broadcast %35 : vector<1x256xf32> to vector<16x256xf32>
    %37 = arith.mulf %27, %36 : vector<16x256xf32>
    %38 = vector.extract_strided_slice %12 {offsets = [0, 3], sizes = [16, 1], strides = [1, 1]} : vector<16x9xf32> to vector<16x1xf32>
    %39 = vector.broadcast %38 : vector<16x1xf32> to vector<16x256xf32>
    %40 = arith.mulf %37, %39 : vector<16x256xf32>
    %41 = arith.addf %34, %40 : vector<16x256xf32>
    %c241_i32 = arith.constant 241 : i32
    %42 = tpu.dynamic_rotate %11 by %c241_i32 dim 1 : vector<16x256xf32>, i32 -> vector<16x256xf32>
    %c15_i32 = arith.constant 15 : i32
    %43 = tpu.dynamic_rotate %11 by %c15_i32 dim 1 : vector<16x256xf32>, i32 -> vector<16x256xf32>
    %c241_i32_16 = arith.constant 241 : i32
    %44 = tpu.dynamic_rotate %13 by %c241_i32_16 dim 1 : vector<1x256xi32>, i32 -> vector<1x256xi32>
    %c2 = arith.constant 2 : index
    %c0_17 = arith.constant 0 : index
    %45 = vector.load %arg12[%c2, %c0_17] : memref<5x256xi32, #tpu.memory_space<vmem>>, vector<1x256xi32>
    %46 = arith.cmpi eq, %44, %45 : vector<1x256xi32>
    %47 = vector.shape_cast %46 : vector<1x256xi1> to vector<1x256xi1>
    %48 = vector.broadcast %47 : vector<1x256xi1> to vector<16x256xi1>
    %49 = arith.select %48, %42, %43 : vector<16x256xi1>, vector<16x256xf32>
    %50 = vector.shape_cast %46 : vector<1x256xi1> to vector<1x256xi1>
    %51 = vector.broadcast %50 : vector<1x256xi1> to vector<16x256xi1>
    %52 = arith.select %51, %43, %42 : vector<16x256xi1>, vector<16x256xf32>
    %c6 = arith.constant 6 : index
    %c0_18 = arith.constant 0 : index
    %53 = vector.load %arg11[%c6, %c0_18] : memref<9x256xf32, #tpu.memory_space<vmem>>, vector<1x256xf32>
    %54 = vector.broadcast %53 : vector<1x256xf32> to vector<16x256xf32>
    %55 = arith.mulf %49, %54 : vector<16x256xf32>
    %56 = vector.extract_strided_slice %12 {offsets = [0, 6], sizes = [16, 1], strides = [1, 1]} : vector<16x9xf32> to vector<16x1xf32>
    %57 = vector.broadcast %56 : vector<16x1xf32> to vector<16x256xf32>
    %58 = arith.mulf %55, %57 : vector<16x256xf32>
    %59 = arith.addf %41, %58 : vector<16x256xf32>
    %c2_19 = arith.constant 2 : index
    %c0_20 = arith.constant 0 : index
    %60 = vector.load %arg11[%c2_19, %c0_20] : memref<9x256xf32, #tpu.memory_space<vmem>>, vector<1x256xf32>
    %61 = vector.broadcast %60 : vector<1x256xf32> to vector<16x256xf32>
    %62 = arith.mulf %52, %61 : vector<16x256xf32>
    %63 = vector.extract_strided_slice %12 {offsets = [0, 2], sizes = [16, 1], strides = [1, 1]} : vector<16x9xf32> to vector<16x1xf32>
    %64 = vector.broadcast %63 : vector<16x1xf32> to vector<16x256xf32>
    %65 = arith.mulf %62, %64 : vector<16x256xf32>
    %66 = arith.addf %59, %65 : vector<16x256xf32>
    %c240_i32 = arith.constant 240 : i32
    %67 = tpu.dynamic_rotate %11 by %c240_i32 dim 1 : vector<16x256xf32>, i32 -> vector<16x256xf32>
    %c16_i32 = arith.constant 16 : i32
    %68 = tpu.dynamic_rotate %11 by %c16_i32 dim 1 : vector<16x256xf32>, i32 -> vector<16x256xf32>
    %c240_i32_21 = arith.constant 240 : i32
    %69 = tpu.dynamic_rotate %13 by %c240_i32_21 dim 1 : vector<1x256xi32>, i32 -> vector<1x256xi32>
    %c3_22 = arith.constant 3 : index
    %c0_23 = arith.constant 0 : index
    %70 = vector.load %arg12[%c3_22, %c0_23] : memref<5x256xi32, #tpu.memory_space<vmem>>, vector<1x256xi32>
    %71 = arith.cmpi eq, %69, %70 : vector<1x256xi32>
    %72 = vector.shape_cast %71 : vector<1x256xi1> to vector<1x256xi1>
    %73 = vector.broadcast %72 : vector<1x256xi1> to vector<16x256xi1>
    %74 = arith.select %73, %67, %68 : vector<16x256xi1>, vector<16x256xf32>
    %75 = vector.shape_cast %71 : vector<1x256xi1> to vector<1x256xi1>
    %76 = vector.broadcast %75 : vector<1x256xi1> to vector<16x256xi1>
    %77 = arith.select %76, %68, %67 : vector<16x256xi1>, vector<16x256xf32>
    %c7 = arith.constant 7 : index
    %c0_24 = arith.constant 0 : index
    %78 = vector.load %arg11[%c7, %c0_24] : memref<9x256xf32, #tpu.memory_space<vmem>>, vector<1x256xf32>
    %79 = vector.broadcast %78 : vector<1x256xf32> to vector<16x256xf32>
    %80 = arith.mulf %74, %79 : vector<16x256xf32>
    %81 = vector.extract_strided_slice %12 {offsets = [0, 7], sizes = [16, 1], strides = [1, 1]} : vector<16x9xf32> to vector<16x1xf32>
    %82 = vector.broadcast %81 : vector<16x1xf32> to vector<16x256xf32>
    %83 = arith.mulf %80, %82 : vector<16x256xf32>
    %84 = arith.addf %66, %83 : vector<16x256xf32>
    %c1_25 = arith.constant 1 : index
    %c0_26 = arith.constant 0 : index
    %85 = vector.load %arg11[%c1_25, %c0_26] : memref<9x256xf32, #tpu.memory_space<vmem>>, vector<1x256xf32>
    %86 = vector.broadcast %85 : vector<1x256xf32> to vector<16x256xf32>
    %87 = arith.mulf %77, %86 : vector<16x256xf32>
    %88 = vector.extract_strided_slice %12 {offsets = [0, 1], sizes = [16, 1], strides = [1, 1]} : vector<16x9xf32> to vector<16x1xf32>
    %89 = vector.broadcast %88 : vector<16x1xf32> to vector<16x256xf32>
    %90 = arith.mulf %87, %89 : vector<16x256xf32>
    %91 = arith.addf %84, %90 : vector<16x256xf32>
    %c239_i32 = arith.constant 239 : i32
    %92 = tpu.dynamic_rotate %11 by %c239_i32 dim 1 : vector<16x256xf32>, i32 -> vector<16x256xf32>
    %c17_i32 = arith.constant 17 : i32
    %93 = tpu.dynamic_rotate %11 by %c17_i32 dim 1 : vector<16x256xf32>, i32 -> vector<16x256xf32>
    %c239_i32_27 = arith.constant 239 : i32
    %94 = tpu.dynamic_rotate %13 by %c239_i32_27 dim 1 : vector<1x256xi32>, i32 -> vector<1x256xi32>
    %c4 = arith.constant 4 : index
    %c0_28 = arith.constant 0 : index
    %95 = vector.load %arg12[%c4, %c0_28] : memref<5x256xi32, #tpu.memory_space<vmem>>, vector<1x256xi32>
    %96 = arith.cmpi eq, %94, %95 : vector<1x256xi32>
    %97 = vector.shape_cast %96 : vector<1x256xi1> to vector<1x256xi1>
    %98 = vector.broadcast %97 : vector<1x256xi1> to vector<16x256xi1>
    %99 = arith.select %98, %92, %93 : vector<16x256xi1>, vector<16x256xf32>
    %100 = vector.shape_cast %96 : vector<1x256xi1> to vector<1x256xi1>
    %101 = vector.broadcast %100 : vector<1x256xi1> to vector<16x256xi1>
    %102 = arith.select %101, %93, %92 : vector<16x256xi1>, vector<16x256xf32>
    %c8 = arith.constant 8 : index
    %c0_29 = arith.constant 0 : index
    %103 = vector.load %arg11[%c8, %c0_29] : memref<9x256xf32, #tpu.memory_space<vmem>>, vector<1x256xf32>
    %104 = vector.broadcast %103 : vector<1x256xf32> to vector<16x256xf32>
    %105 = arith.mulf %99, %104 : vector<16x256xf32>
    %106 = vector.extract_strided_slice %12 {offsets = [0, 8], sizes = [16, 1], strides = [1, 1]} : vector<16x9xf32> to vector<16x1xf32>
    %107 = vector.broadcast %106 : vector<16x1xf32> to vector<16x256xf32>
    %108 = arith.mulf %105, %107 : vector<16x256xf32>
    %109 = arith.addf %91, %108 : vector<16x256xf32>
    %c0_30 = arith.constant 0 : index
    %c0_31 = arith.constant 0 : index
    %110 = vector.load %arg11[%c0_30, %c0_31] : memref<9x256xf32, #tpu.memory_space<vmem>>, vector<1x256xf32>
    %111 = vector.broadcast %110 : vector<1x256xf32> to vector<16x256xf32>
    %112 = arith.mulf %102, %111 : vector<16x256xf32>
    %113 = vector.extract_strided_slice %12 {offsets = [0, 0], sizes = [16, 1], strides = [1, 1]} : vector<16x9xf32> to vector<16x1xf32>
    %114 = vector.broadcast %113 : vector<16x1xf32> to vector<16x256xf32>
    %115 = arith.mulf %112, %114 : vector<16x256xf32>
    %116 = arith.addf %109, %115 : vector<16x256xf32>
    %117 = vector.extract_strided_slice %2 {offsets = [0, 1], sizes = [16, 1], strides = [1, 1]} : vector<16x4xf32> to vector<16x1xf32>
    %118 = vector.broadcast %117 : vector<16x1xf32> to vector<16x256xf32>
    %119 = arith.addf %116, %118 : vector<16x256xf32>
    %cst_32 = arith.constant 0.000000e+00 : f32
    %cst_33 = arith.constant 6.000000e+00 : f32
    %120 = vector.broadcast %cst_32 : f32 to vector<16x256xf32>
    %121 = arith.maximumf %120, %119 : vector<16x256xf32>
    %122 = vector.broadcast %cst_33 : f32 to vector<16x256xf32>
    %123 = arith.minimumf %122, %121 : vector<16x256xf32>
    %c0_34 = arith.constant 0 : index
    %c0_35 = arith.constant 0 : index
    %124 = vector.load %arg13[%c0_34, %c0_35] : memref<256x16xf32, #tpu.memory_space<vmem>>, vector<256x16xf32>
    %cst_36 = arith.constant dense<0.000000e+00> : vector<16x16xf32>
    %125 = tpu.matmul %123, %124, %cst_36 {dimension_numbers = #tpu.dot_dimension_numbers<[1], [0], [0], [1], [0, 0, 1, 1], [], []>} : vector<16x256xf32>, vector<256x16xf32>, vector<16x16xf32> -> vector<16x16xf32>
    %c0_37 = arith.constant 0 : index
    %c0_38 = arith.constant 0 : index
    %126 = vector.load %arg14[%c0_37, %c0_38] : memref<256x16xf32, #tpu.memory_space<vmem>>, vector<256x16xf32>
    %cst_39 = arith.constant dense<0.000000e+00> : vector<16x16xf32>
    %127 = tpu.matmul %123, %126, %cst_39 {dimension_numbers = #tpu.dot_dimension_numbers<[1], [0], [0], [1], [0, 0, 1, 1], [], []>} : vector<16x256xf32>, vector<256x16xf32>, vector<16x16xf32> -> vector<16x16xf32>
    %c0_40 = arith.constant 0 : index
    %c0_41 = arith.constant 0 : index
    %128 = vector.load %arg5[%c0_40, %c0_41] : memref<8x16xf32, #tpu.memory_space<vmem>>, vector<8x16xf32>
    %cst_42 = arith.constant dense<0.000000e+00> : vector<8x16xf32>
    %129 = tpu.matmul %128, %125, %cst_42 {dimension_numbers = #tpu.dot_dimension_numbers<[1], [0], [0], [1], [0, 0, 1, 1], [], []>} : vector<8x16xf32>, vector<16x16xf32>, vector<8x16xf32> -> vector<8x16xf32>
    %c0_43 = arith.constant 0 : index
    %c0_44 = arith.constant 0 : index
    %130 = vector.load %arg6[%c0_43, %c0_44] : memref<8x1xf32, #tpu.memory_space<vmem>>, vector<8x1xf32>
    %131 = vector.broadcast %130 : vector<8x1xf32> to vector<8x16xf32>
    %132 = arith.addf %129, %131 : vector<8x16xf32>
    %cst_45 = arith.constant 3.000000e+00 : f32
    %133 = vector.broadcast %cst_45 : f32 to vector<8x16xf32>
    %134 = arith.addf %132, %133 : vector<8x16xf32>
    %cst_46 = arith.constant 0.000000e+00 : f32
    %cst_47 = arith.constant 6.000000e+00 : f32
    %135 = vector.broadcast %cst_46 : f32 to vector<8x16xf32>
    %136 = arith.maximumf %135, %134 : vector<8x16xf32>
    %137 = vector.broadcast %cst_47 : f32 to vector<8x16xf32>
    %138 = arith.minimumf %137, %136 : vector<8x16xf32>
    %cst_48 = arith.constant 0.166666672 : f32
    %139 = vector.broadcast %cst_48 : f32 to vector<8x16xf32>
    %140 = arith.mulf %138, %139 : vector<8x16xf32>
    %141 = arith.mulf %132, %140 : vector<8x16xf32>
    %c0_49 = arith.constant 0 : index
    %c0_50 = arith.constant 0 : index
    %142 = vector.load %arg5[%c0_49, %c0_50] : memref<8x16xf32, #tpu.memory_space<vmem>>, vector<8x16xf32>
    %cst_51 = arith.constant dense<0.000000e+00> : vector<8x16xf32>
    %143 = tpu.matmul %142, %127, %cst_51 {dimension_numbers = #tpu.dot_dimension_numbers<[1], [0], [0], [1], [0, 0, 1, 1], [], []>} : vector<8x16xf32>, vector<16x16xf32>, vector<8x16xf32> -> vector<8x16xf32>
    %c0_52 = arith.constant 0 : index
    %c0_53 = arith.constant 0 : index
    %144 = vector.load %arg6[%c0_52, %c0_53] : memref<8x1xf32, #tpu.memory_space<vmem>>, vector<8x1xf32>
    %145 = vector.broadcast %144 : vector<8x1xf32> to vector<8x16xf32>
    %146 = arith.addf %143, %145 : vector<8x16xf32>
    %cst_54 = arith.constant 3.000000e+00 : f32
    %147 = vector.broadcast %cst_54 : f32 to vector<8x16xf32>
    %148 = arith.addf %146, %147 : vector<8x16xf32>
    %cst_55 = arith.constant 0.000000e+00 : f32
    %cst_56 = arith.constant 6.000000e+00 : f32
    %149 = vector.broadcast %cst_55 : f32 to vector<8x16xf32>
    %150 = arith.maximumf %149, %148 : vector<8x16xf32>
    %151 = vector.broadcast %cst_56 : f32 to vector<8x16xf32>
    %152 = arith.minimumf %151, %150 : vector<8x16xf32>
    %cst_57 = arith.constant 0.166666672 : f32
    %153 = vector.broadcast %cst_57 : f32 to vector<8x16xf32>
    %154 = arith.mulf %152, %153 : vector<8x16xf32>
    %155 = arith.mulf %146, %154 : vector<8x16xf32>
    %c0_58 = arith.constant 0 : index
    %c0_59 = arith.constant 0 : index
    %156 = vector.load %arg7[%c0_58, %c0_59] : memref<16x8xf32, #tpu.memory_space<vmem>>, vector<16x8xf32>
    %cst_60 = arith.constant dense<0.000000e+00> : vector<16x16xf32>
    %157 = tpu.matmul %156, %141, %cst_60 {dimension_numbers = #tpu.dot_dimension_numbers<[1], [0], [0], [1], [0, 0, 1, 1], [], []>} : vector<16x8xf32>, vector<8x16xf32>, vector<16x16xf32> -> vector<16x16xf32>
    %158 = vector.extract_strided_slice %2 {offsets = [0, 2], sizes = [16, 1], strides = [1, 1]} : vector<16x4xf32> to vector<16x1xf32>
    %159 = vector.broadcast %158 : vector<16x1xf32> to vector<16x16xf32>
    %160 = arith.addf %157, %159 : vector<16x16xf32>
    %161 = arith.negf %160 : vector<16x16xf32>
    %162 = math.exp %161 : vector<16x16xf32>
    %cst_61 = arith.constant 1.000000e+00 : f32
    %163 = vector.broadcast %cst_61 : f32 to vector<16x16xf32>
    %164 = arith.addf %163, %162 : vector<16x16xf32>
    %165 = arith.divf %163, %164 : vector<16x16xf32>
    %c0_62 = arith.constant 0 : index
    %c0_63 = arith.constant 0 : index
    %166 = vector.load %arg8[%c0_62, %c0_63] : memref<16x8xf32, #tpu.memory_space<vmem>>, vector<16x8xf32>
    %cst_64 = arith.constant dense<0.000000e+00> : vector<16x16xf32>
    %167 = tpu.matmul %166, %155, %cst_64 {dimension_numbers = #tpu.dot_dimension_numbers<[1], [0], [0], [1], [0, 0, 1, 1], [], []>} : vector<16x8xf32>, vector<8x16xf32>, vector<16x16xf32> -> vector<16x16xf32>
    %168 = vector.extract_strided_slice %2 {offsets = [0, 3], sizes = [16, 1], strides = [1, 1]} : vector<16x4xf32> to vector<16x1xf32>
    %169 = vector.broadcast %168 : vector<16x1xf32> to vector<16x16xf32>
    %170 = arith.addf %167, %169 : vector<16x16xf32>
    %171 = arith.negf %170 : vector<16x16xf32>
    %172 = math.exp %171 : vector<16x16xf32>
    %cst_65 = arith.constant 1.000000e+00 : f32
    %173 = vector.broadcast %cst_65 : f32 to vector<16x16xf32>
    %174 = arith.addf %173, %172 : vector<16x16xf32>
    %175 = arith.divf %173, %174 : vector<16x16xf32>
    %c0_66 = arith.constant 0 : index
    %c0_67 = arith.constant 0 : index
    %176 = vector.load %arg15[%c0_66, %c0_67] : memref<16x256xf32, #tpu.memory_space<vmem>>, vector<16x256xf32>
    %cst_68 = arith.constant dense<0.000000e+00> : vector<16x256xf32>
    %177 = tpu.matmul %165, %176, %cst_68 {dimension_numbers = #tpu.dot_dimension_numbers<[1], [0], [0], [1], [0, 0, 1, 1], [], []>} : vector<16x16xf32>, vector<16x256xf32>, vector<16x256xf32> -> vector<16x256xf32>
    %178 = arith.mulf %123, %177 : vector<16x256xf32>
    %c0_69 = arith.constant 0 : index
    %c0_70 = arith.constant 0 : index
    %179 = vector.load %arg16[%c0_69, %c0_70] : memref<16x256xf32, #tpu.memory_space<vmem>>, vector<16x256xf32>
    %cst_71 = arith.constant dense<0.000000e+00> : vector<16x256xf32>
    %180 = tpu.matmul %175, %179, %cst_71 {dimension_numbers = #tpu.dot_dimension_numbers<[1], [0], [0], [1], [0, 0, 1, 1], [], []>} : vector<16x16xf32>, vector<16x256xf32>, vector<16x256xf32> -> vector<16x256xf32>
    %181 = arith.mulf %178, %180 : vector<16x256xf32>
    %c0_72 = arith.constant 0 : index
    %c0_73 = arith.constant 0 : index
    %182 = vector.load %arg9[%c0_72, %c0_73] : memref<4x16xf32, #tpu.memory_space<vmem>>, vector<4x16xf32>
    %cst_74 = arith.constant dense<0.000000e+00> : vector<4x256xf32>
    %183 = tpu.matmul %182, %181, %cst_74 {dimension_numbers = #tpu.dot_dimension_numbers<[1], [0], [0], [1], [0, 0, 1, 1], [], []>} : vector<4x16xf32>, vector<16x256xf32>, vector<4x256xf32> -> vector<4x256xf32>
    %c0_75 = arith.constant 0 : index
    %c0_76 = arith.constant 0 : index
    %184 = vector.load %arg10[%c0_75, %c0_76] : memref<4x1xf32, #tpu.memory_space<vmem>>, vector<4x1xf32>
    %185 = vector.broadcast %184 : vector<4x1xf32> to vector<4x256xf32>
    %186 = arith.addf %183, %185 : vector<4x256xf32>
    %187 = arith.addf %186, %1 : vector<4x256xf32>
    %c0_77 = arith.constant 0 : index
    %c0_78 = arith.constant 0 : index
    %c0_79 = arith.constant 0 : index
    %188 = vector.load %arg17[%c0_77, %c0_78, %c0_79] : memref<1x4x256xf32, #tpu.memory_space<vmem>>, vector<1x4x256xf32>
    %189 = vector.shape_cast %188 : vector<1x4x256xf32> to vector<4x256xf32>
    %190 = vector.shape_cast %187 : vector<4x256xf32> to vector<1x4x256xf32>
    tpu.vector_store %arg17[%c0_77, %c0_78, %c0_79], %190 {strides = array<i32>} : memref<1x4x256xf32, #tpu.memory_space<vmem>>, vector<1x4x256xf32>,
    return
  }
  func.func @transform_0(%arg0: i32) -> (i32, i32, i32) {
    %c0_i32 = arith.constant 0 : i32
    %c0_i32_0 = arith.constant 0 : i32
    %c0_i32_1 = arith.constant 0 : i32
    return %arg0, %c0_i32, %c0_i32_0 : i32, i32, i32
  }
  func.func @transform_1(%arg0: i32) -> (i32, i32) {
    %c0_i32 = arith.constant 0 : i32
    %c0_i32_0 = arith.constant 0 : i32
    %c0_i32_1 = arith.constant 0 : i32
    return %c0_i32, %c0_i32_0 : i32, i32
  }
  func.func @transform_2(%arg0: i32) -> (i32, i32) {
    %c0_i32 = arith.constant 0 : i32
    %c0_i32_0 = arith.constant 0 : i32
    %c0_i32_1 = arith.constant 0 : i32
    return %c0_i32, %c0_i32_0 : i32, i32
  }
  func.func @transform_3(%arg0: i32) -> (i32, i32) {
    %c0_i32 = arith.constant 0 : i32
    %c0_i32_0 = arith.constant 0 : i32
    %c0_i32_1 = arith.constant 0 : i32
    return %c0_i32, %c0_i32_0 : i32, i32
  }
  func.func @transform_4(%arg0: i32) -> (i32, i32) {
    %c0_i32 = arith.constant 0 : i32
    %c0_i32_0 = arith.constant 0 : i32
    %c0_i32_1 = arith.constant 0 : i32
    return %c0_i32, %c0_i32_0 : i32, i32
  }
  func.func @transform_5(%arg0: i32) -> (i32, i32) {
    %c0_i32 = arith.constant 0 : i32
    %c0_i32_0 = arith.constant 0 : i32
    %c0_i32_1 = arith.constant 0 : i32
    return %c0_i32, %c0_i32_0 : i32, i32
  }
  func.func @transform_6(%arg0: i32) -> (i32, i32) {
    %c0_i32 = arith.constant 0 : i32
    %c0_i32_0 = arith.constant 0 : i32
    %c0_i32_1 = arith.constant 0 : i32
    return %c0_i32, %c0_i32_0 : i32, i32
  }
  func.func @transform_7(%arg0: i32) -> (i32, i32) {
    %c0_i32 = arith.constant 0 : i32
    %c0_i32_0 = arith.constant 0 : i32
    %c0_i32_1 = arith.constant 0 : i32
    return %c0_i32, %c0_i32_0 : i32, i32
  }
  func.func @transform_8(%arg0: i32) -> (i32, i32) {
    %c0_i32 = arith.constant 0 : i32
    %c0_i32_0 = arith.constant 0 : i32
    %c0_i32_1 = arith.constant 0 : i32
    return %c0_i32, %c0_i32_0 : i32, i32
  }
  func.func @transform_9(%arg0: i32) -> (i32, i32) {
    %c0_i32 = arith.constant 0 : i32
    %c0_i32_0 = arith.constant 0 : i32
    %c0_i32_1 = arith.constant 0 : i32
    return %c0_i32, %c0_i32_0 : i32, i32
  }
  func.func @transform_10(%arg0: i32) -> (i32, i32) {
    %c0_i32 = arith.constant 0 : i32
    %c0_i32_0 = arith.constant 0 : i32
    %c0_i32_1 = arith.constant 0 : i32
    return %c0_i32, %c0_i32_0 : i32, i32
  }
  func.func @transform_11(%arg0: i32) -> (i32, i32) {
    %c0_i32 = arith.constant 0 : i32
    %c0_i32_0 = arith.constant 0 : i32
    %c0_i32_1 = arith.constant 0 : i32
    return %c0_i32, %c0_i32_0 : i32, i32
  }
  func.func @transform_12(%arg0: i32) -> (i32, i32) {
    %c0_i32 = arith.constant 0 : i32
    %c0_i32_0 = arith.constant 0 : i32
    %c0_i32_1 = arith.constant 0 : i32
    return %c0_i32, %c0_i32_0 : i32, i32
  }
  func.func @transform_13(%arg0: i32) -> (i32, i32) {
    %c0_i32 = arith.constant 0 : i32
    %c0_i32_0 = arith.constant 0 : i32
    %c0_i32_1 = arith.constant 0 : i32
    return %c0_i32, %c0_i32_0 : i32, i32
  }
  func.func @transform_14(%arg0: i32) -> (i32, i32) {
    %c0_i32 = arith.constant 0 : i32
    %c0_i32_0 = arith.constant 0 : i32
    %c0_i32_1 = arith.constant 0 : i32
    return %c0_i32, %c0_i32_0 : i32, i32
  }
  func.func @transform_15(%arg0: i32) -> (i32, i32) {
    %c0_i32 = arith.constant 0 : i32
    %c0_i32_0 = arith.constant 0 : i32
    %c0_i32_1 = arith.constant 0 : i32
    return %c0_i32, %c0_i32_0 : i32, i32
  }
  func.func @transform_16(%arg0: i32) -> (i32, i32, i32) {
    %c0_i32 = arith.constant 0 : i32
    %c0_i32_0 = arith.constant 0 : i32
    %c0_i32_1 = arith.constant 0 : i32
    return %arg0, %c0_i32, %c0_i32_0 : i32, i32, i32
  }
}

</mosaic_0001>

<bundles_post_ra>
// kernel: tpu_custom_call.1
= control target key start
LH: loop header
LB: loop body
LE: loop exit
PB: predicated region body
PF: predicated region fallthrough
CT: control target
= control target key end

     0   :  { %s3617_s0 = inlined_call_operand.vmem [shape: f32[2,4,256], index: 0, kind: input, shape index: {}]   ;;  %s3618_s1 = inlined_call_operand.vmem [shape: f32[16,4], index: 1, kind: input, shape index: {}]   ;;  %s3619_s2 = inlined_call_operand.vmem [shape: f32[16,4], index: 2, kind: input, shape index: {}]   ;;  %s3620_s3 = inlined_call_operand.vmem [shape: f32[16,9], index: 3, kind: input, shape index: {}]   ;;  %s3621_s4 = inlined_call_operand.vmem [shape: f32[8,16], index: 4, kind: input, shape index: {}]   ;;  %s3622_s5 = inlined_call_operand.vmem [shape: f32[8,1], index: 5, kind: input, shape index: {}]   ;;  %s3623_s6 = inlined_call_operand.vmem [shape: f32[16,8], index: 6, kind: input, shape index: {}]   ;;  %s3624_s7 = inlined_call_operand.vmem [shape: f32[16,8], index: 7, kind: input, shape index: {}]   ;;  %s3625_s8 = inlined_call_operand.vmem [shape: f32[4,16], index: 8, kind: input, shape index: {}]   ;;  %s3626_s9 = inlined_call_operand.vmem [shape: f32[4,1], index: 9, kind: input, shape index: {}]   ;;  %s3627_s10 = inlined_call_operand.vmem [shape: f32[9,256], index: 10, kind: input, shape index: {}]   ;;  %s3628_s11 = inlined_call_operand.vmem [shape: s32[5,256], index: 11, kind: input, shape index: {}]   ;;  %s3629_s12 = inlined_call_operand.vmem [shape: f32[256,16], index: 12, kind: input, shape index: {}]   ;;  %s3630_s13 = inlined_call_operand.vmem [shape: f32[256,16], index: 13, kind: input, shape index: {}]   ;;  %s3631_s14 = inlined_call_operand.vmem [shape: f32[16,256], index: 14, kind: input, shape index: {}]   ;;  %s3632_s15 = inlined_call_operand.vmem [shape: f32[16,256], index: 15, kind: input, shape index: {}]   ;;  %s3633_s16 = inlined_call_operand.hbm [shape: f32[2,4,256], index: 16, kind: output, shape index: {}]  }
   0x1   :  { %3660 = sst [smem:[#allocation15_spill]] %s3617_s0 }
   0x2   :  { %3661 = sst [smem:[#allocation16_spill]] %s3618_s1 }
   0x3   :  { %3662 = sst [smem:[#allocation17_spill]] %s3619_s2 }
   0x4   :  { %3663 = sst [smem:[#allocation18_spill]] %s3620_s3 }
   0x5   :  { %21 = vsyncpa [#allocation3], 0 }
   0x6   :  { %23 = vsyncpa [#allocation3 + $0x1], 0  ;;  %s2634_s21 = smov 0   ;;  %s2636_s22 = smov 0  }
   0x7   :  { %s2638_s23 = smov 0   ;;  %s2640_s24 = smov 0  }
   0x8 LB: > { %3664 = sst [smem:[#allocation5_spill]] %s2514_s21  ;;  %s2655_s25 = sadd.s32 4294967295, %s2526_s24   ;;  %s2526_s24 = sphi %s2640_s24, %s3716_s24   ;;  %s2522_s23 = sphi %s2638_s23, %s3718_s23   ;;  %s2518_s22 = sphi %s2636_s22, %s3720_s22   ;;  %s2514_s21 = sphi %s2634_s21, %s3719_s21  }
   0x9   : > { %3665 = sst [smem:[#allocation6_spill]] %s2522_s23  ;;  %s2127_s26 = sadd.s32 4294967294, %s2526_s24  }
   0xa   : > { %3666 = sst [smem:[#allocation7_spill]] %s2526_s24  ;;  %s2659_s27 = sadd.s32 1, %s2526_s24  }
   0xb   : > { %3667 = sst [smem:[#allocation8_spill]] %s2659_s27  ;;  %s377_s28 = sadd.s32 1, %s2522_s23 }
   0xc   : > { %s374_s29 = ssub.s32 %s2526_s24, %s2659_s27  ;;  %p387_p0 = scmp.ne.s32.totalorder %s2522_s23, %s2518_s22 }
   0xd   : > { %p375_p1 = scmp.eq.s32.totalorder %s374_s29, 0  ;;  %p388_p2 = scmp.eq.s32.totalorder %s2655_s25, 1 }
   0xe   : > { %p393_p3 = scmp.ne.s32.totalorder %s2518_s22, %s2514_s21  ;;  %p394_p4 = scmp.eq.s32.totalorder %s2127_s26, 1 }
   0xf   : > { %s2670_s30 = scalar_select %p375_p1, %s2522_s23, %s377_s28  }
  0x10   : > { %p2672_p5 = por %p388_p2, %p387_p0  ;;  %p2676_p6 = por %p394_p4, %p393_p3 }
  0x11   : > { %3668 = sst [smem:[#allocation9_spill]] %s2670_s30  ;;  %p2130_p7 = scmp.ge.s32.totalorder %s2526_s24, 1 }
  0x12   : > { %s3670_s17 = scalar_select %p2676_p6, 1, 0 }
  0x13   : > { %p465_p8 = scmp.lt.s32.totalorder %s2526_s24, 3 }
  0x14   : > { %3671 = sst [smem:[#allocation10_spill]] %s3670_s17 }
  0x15   : > { %p466_p9 = pnand %p2130_p7, %p465_p8 }
  0x17   : > { %469 = sbr.rel (%p466_p9) target bundleno = 1613 (0x64d), region = 84 }
  0x1e   : > { %p515_p10 = scmp.lt.s32.totalorder %s2655_s25, 1  ;;  %v659_v0 = vlaneseq  ;;  %v3654_v1 = vmov 0.0   ;;  %s3672_s2 = sld [smem:[#allocation17_spill]]  ;;  %v2529_v3 = vmov 0   ;;  %v2530_v9 = vmov 5   ;;  %v1216_v53 = vld [vmem:[%s3629_s12 + $0x80] sm:$0xff] }
  0x1f   : > { %613 = vmatprep.mubr.f32.mxu0 %v3654_v1  ;;  %2424 = vset.pattern.permute.xlu0 %v2529_v3  ;;  %s3673_s3 = sld [smem:[#allocation18_spill]]  ;;  %v636_v7 = vld [vmem:[%s3628_s11] ss:$8 sm:$0x3]  ;;  %s3674_s21 = sld [smem:[#allocation15_spill]]  ;;  %vm544_vm0 = vcmask 1043456  }
  0x20   : > { %s516_s20 = scalar_select %p515_p10, %s2655_s25, 1  ;;  %v680_v4 = vshrl.u32 %v659_v0, 7  ;;  %2426 = vset.pattern.permute.xlu1 %v2530_v9  ;;  %vm537_vm1 = vcmask 31744   ;;  %v2532_v16 = vmov 3   ;;  %v2533_v17 = vmov 4   ;;  %v1217_v54 = vld [vmem:[%s3629_s12 + $0x88] sm:$0xff] }
  0x21   : > { %s3676_s1 = sld [smem:[#allocation16_spill]]  ;;  %v2535_v20 = vmov 6   ;;  %s3641_s18 = smov 112   ;;  %v2537_v21 = vmov 2   ;;  %v2538_v22 = vmov 7   ;;  %v2540_v23 = vmov 8  }
  0x22   : > { %s2169_s29 = sshll.u32 %s516_s20, 3  ;;  %v2706_v8 = vsub.s32 0, %v680_v4  ;;  %v2714_v10 = vsub.s32 1, %v680_v4  ;;  %s3651_s20 = smov 113   ;;  %v2541_v24 = vmov 1   ;;  %v2757_v28 = vand.u32 127, %v659_v0 }
  0x23   : > { %s3639_s19 = smov 111   ;;  %s3645_s23 = smov 16   ;;  %v2283_v55 = vpack.c.bf16 %v1217_v54, %v1216_v53  ;;  %v1323_v56 = vld [vmem:[%s3630_s13 + $0x80] sm:$0xff]  ;;  %v1324_v57 = vld [vmem:[%s3630_s13 + $0x88] sm:$0xff]  ;;  %v1207_v54 = vld [vmem:[%s3629_s12 + $0x38] sm:$0xff] }
  0x24   : > { %v2687_v2 = vld [vmem:[%s3672_s2] sm:$0xff]  ;;  %v2696_v5 = vld [vmem:[%s3672_s2 + $0x8] sm:$0xff]  ;;  %v682_v13 = vrot.slane %v636_v7, %v2706_v8  ;;  %v686_v15 = vrot.slane %v636_v7, %v2714_v10  ;;  %vm661_vm2 = vcmp.lt.s32.totalorder %v2757_v28, 127  ;;  %vm799_vm3 = vcmp.lt.s32.totalorder %v2757_v28, 113  ;;  %s3647_s30 = smov 1   ;;  %s3649_s27 = smov 15  }
  0x25   : > { %527 = vperm.xlu0 %2424, %v2687_v2   ;;  %v2701_v6 = vld [vmem:[%s3673_s3] sm:$0xff]  ;;  %s2711_s26 = scalar_lea.vmem %s3674_s21, %s2169_s29  ;;  %s3652_s21 = smov 127   ;;  %v635_v19 = vld [vmem:[%s3673_s3 + $0x8] sm:$0xff]  ;;  %v2315_v60 = vpack.c.bf16 %v1324_v57, %v1323_v56  ;;  %2284 = vmatprep.subr.bf16.mxu1 %v2283_v55  ;;  %v1219_v7 = vld [vmem:[%s3629_s12 + $0x98] sm:$0xff]  ;;  %vm929_vm6 = vcmp.lt.s32.totalorder %v2757_v28, 112  ;;  %vm1059_vm10 = vcmp.lt.s32.totalorder %v2757_v28, 111 }
  0x26   : > { %743 = vperm.xlu1 %2426, %v2701_v6   ;;  %v520_v11 = vld [vmem:[%s2711_s26] sm:$0xff]  ;;  %s3643_s17 = smov 17   ;;  %v1201_v61 = vld [vmem:[%s3629_s12 + $0x8] sm:$0xff]  ;;  %s3679_s2 = smov 127   ;;  %v1313_v55 = vld [vmem:[%s3630_s13 + $0x30] sm:$0xff]  ;;  %vm674_vm14 = vcmp.lt.s32.totalorder %v2757_v28, 1 }
  0x27   : > { %v2717_v12 = vcombine.high %v520_v11, %v520_v11  ;;  %v523_v14 = vld [vmem:[%s3676_s1] sm:$0xff]  ;;  %v524_v18 = vld [vmem:[%s3676_s1 + $0x8] sm:$0xff]  ;;  %s3678_s1 = smov 1   ;;  %s3681_s3 = smov 16   ;;  %v1314_v56 = vld [vmem:[%s3630_s13 + $0x38] sm:$0xff] }
  0x28   : > { %v1200_v58 = vld [vmem:[%s3629_s12] sm:$0xff]  ;;  %v1308_v63 = vld [vmem:[%s3630_s13 + $0x8] sm:$0xff] }
  0x29   : > { %3675 = vst [vmem:[#allocation11_spill] sm:$0xff] %v2717_v12  ;;  %532 = vperm.xlu0 %2424, %v2696_v5   ;;  %2134 = vmatprep.subr.msk.mxu0 %vm544_vm0, %v2717_v12  ;;  %v1307_v62 = vld [vmem:[%s3630_s13] sm:$0xff]  ;;  %v2285_v0 = vpack.c.bf16 %v1201_v61, %v1200_v58  ;;  %v2329_v58 = vpack.c.bf16 %v1314_v56, %v1313_v55  ;;  %v1231_v55 = vld [vmem:[%s3629_s12 + $0xf8] sm:$0xff] }
  0x2a   : > { %687 = vrot.lane.b32.xlu1 %v682_v13, %s3652_s21  ;;  %2135 = vmatpush1.msk.msra.mxu0 %vm544_vm0, %v520_v11  ;;  %v2317_v4 = vpack.c.bf16 %v1308_v63, %v1307_v62  ;;  %v1325_v11 = vld [vmem:[%s3630_s13 + $0x90] sm:$0xff]  ;;  %v1331_v62 = vld [vmem:[%s3630_s13 + $0xc0] sm:$0xff]  ;;  %v1332_v63 = vld [vmem:[%s3630_s13 + $0xc8] sm:$0xff] }
  0x2b   : > { %2427 = vset.pattern.permute.xlu1 %v2532_v16  ;;  %2136 = vmatmul.mubr.msk.f32.vlgmr.msra.gmra.mrb[0].mxu0 %vm537_vm1, %v523_v14  ;;  %v1202_v14 = vld [vmem:[%s3629_s12 + $0x10] sm:$0xff] }
  0x2c   : > { %619 = vmatprep.mubr.f32.mxu0 %v3654_v1  ;;  %2316 = vmatprep.subr.bf16.mxu0 %v2315_v60  ;;  %v1225_v60 = vld [vmem:[%s3629_s12 + $0xc8] sm:$0xff] }
  0x2d   : > { %2425 = vset.pattern.permute.xlu0 %v2533_v17  ;;  %2286 = vmatpush3.bf16.msra.mxu1 %v2285_v0  ;;  %v1208_v0 = vld [vmem:[%s3629_s12 + $0x40] sm:$0xff] }
  0x2e   : > { %639 = vperm.xlu0 %2425, %v2701_v6   ;;  %689 = vrot.lane.b32.xlu1 %v686_v15, %s3652_s21 }
  0x2f   : > { %2137 = vmatmul.mubr.msk.f32.gmra.mrb[2].mxu0 %vm537_vm1, %v524_v18  ;;  %v1203_v18 = vld [vmem:[%s3629_s12 + $0x18] sm:$0xff] }
  0x30   : > { %2318 = vmatpush3.bf16.msra.mxu0 %v2317_v4 }
  0x32   : > { %817 = vrot.lane.b32.xlu0 %v682_v13, %s3651_s20  ;;  %776 = vperm.xlu1 %2427, %v2701_v6  }
  0x36   : > { %644 = vperm.xlu0 %2425, %v635_v19   ;;  %819 = vrot.lane.b32.xlu1 %v686_v15, %s3651_s20 }
  0x37   : > { %2428 = vset.pattern.permute.xlu1 %v2530_v9 }
  0x3a   : > { %2429 = vset.pattern.permute.xlu0 %v2535_v20  ;;  %747 = vperm.xlu1 %2428, %v635_v19   ;;  %v1310_v20 = vld [vmem:[%s3630_s13 + $0x18] sm:$0xff] }
  0x3b   : > { %873 = vperm.xlu0 %2429, %v2701_v6  }
  0x3e   : > { %2430 = vset.pattern.permute.xlu1 %v2532_v16 }
  0x3f   : > { %947 = vrot.lane.b32.xlu0 %v682_v13, %s3641_s18  ;;  %780 = vperm.xlu1 %2430, %v635_v19  }
  0x43   : > { %877 = vperm.xlu0 %2429, %v635_v19   ;;  %2431 = vset.pattern.permute.xlu1 %v2537_v21 }
  0x44   : > { %906 = vperm.xlu1 %2431, %v2701_v6  }
  0x47   : > { %2433 = vset.pattern.permute.xlu0 %v2537_v21 }
  0x48   : > { %910 = vperm.xlu0 %2433, %v635_v19   ;;  %949 = vrot.lane.b32.xlu1 %v686_v15, %s3641_s18 }
  0x49   : > { %2432 = vset.pattern.permute.xlu1 %v2538_v22 }
  0x4c   : > { %1079 = vrot.lane.b32.xlu0 %v686_v15, %s3639_s19  ;;  %1003 = vperm.xlu1 %2432, %v2701_v6  }
  0x4d   : > { %2436 = vset.pattern.permute.xlu0 %v2540_v23 }
  0x50   : > { %1133 = vperm.xlu0 %2436, %v2701_v6   ;;  %2434 = vset.pattern.permute.xlu1 %v2541_v24 }
  0x51   : > { %1036 = vperm.xlu1 %2434, %v2701_v6  }
  0x54   : > { %1137 = vperm.xlu0 %2436, %v635_v19  }
  0x55   : > { %1077 = vrot.lane.b32.xlu1 %v682_v13, %s3639_s19  ;;  %v1326_v13 = vld [vmem:[%s3630_s13 + $0x98] sm:$0xff] }
  0x56   : > { %2435 = vset.pattern.permute.xlu1 %v2538_v22  ;;  %v2319_v17 = vpack.c.bf16 %v1326_v13, %v1325_v11  ;;  %v2289_v22 = vpack.c.bf16 %v1203_v18, %v1202_v14  ;;  %v1316_v11 = vld [vmem:[%s3630_s13 + $0x48] sm:$0xff]  ;;  %v1227_v18 = vld [vmem:[%s3629_s12 + $0xd8] sm:$0xff] }
  0x58   : > { %2439 = vset.pattern.permute.xlu0 %v2541_v24  ;;  %2320 = vmatprep.subr.bf16.mxu0 %v2319_v17  ;;  %v1226_v17 = vld [vmem:[%s3629_s12 + $0xd0] sm:$0xff] }
  0x59   : > { %1007 = vperm.xlu1 %2435, %v635_v19  }
  0x5d   : > { %2437 = vset.pattern.permute.xlu1 %v2541_v24  ;;  %v1220_v24 = vld [vmem:[%s3629_s12 + $0xa0] sm:$0xff] }
  0x5e   : > { %1040 = vperm.xlu1 %2437, %v635_v19  }
  0x62   : > { %2438 = vset.pattern.permute.xlu1 %v2529_v3 }
  0x63   : > { %1165 = vperm.xlu1 %2438, %v2701_v6   ;;  %v1218_v6 = vld [vmem:[%s3629_s12 + $0x90] sm:$0xff] }
  0x64   : > { %v2287_v9 = vpack.c.bf16 %v1219_v7, %v1218_v6  ;;  %v2331_v6 = vpack.c.bf16 %v1332_v63, %v1331_v62  ;;  %v1209_v7 = vld [vmem:[%s3629_s12 + $0x48] sm:$0xff]  ;;  %v1215_v62 = vld [vmem:[%s3629_s12 + $0x78] sm:$0xff]  ;;  %v1321_v63 = vld [vmem:[%s3630_s13 + $0x70] sm:$0xff] }
  0x65   : > { %v2301_v13 = vpack.c.bf16 %v1209_v7, %v1208_v0  ;;  %v1322_v0 = vld [vmem:[%s3630_s13 + $0x78] sm:$0xff] }
  0x66   : > { %2288 = vmatprep.subr.bf16.mxu1 %v2287_v9  ;;  %v1315_v9 = vld [vmem:[%s3630_s13 + $0x40] sm:$0xff]  ;;  %v2345_v7 = vpack.c.bf16 %v1322_v0, %v1321_v63 }
  0x67   : > { %1169 = vperm.xlu1 %2438, %v635_v19   ;;  %v1309_v19 = vld [vmem:[%s3630_s13 + $0x10] sm:$0xff]  ;;  %2290 = vmatpush3.bf16.msra.mxu1 %v2289_v22  ;;  %v2333_v14 = vpack.c.bf16 %v1316_v11, %v1315_v9  ;;  %v1334_v22 = vld [vmem:[%s3630_s13 + $0xd8] sm:$0xff]  ;;  %v1415_v9 = vld [vmem:[%s3622_s5] sm:$0xff] }
  0x68   : > { %v2321_v23 = vpack.c.bf16 %v1310_v20, %v1309_v19  ;;  %v1333_v19 = vld [vmem:[%s3630_s13 + $0xd0] sm:$0xff]  ;;  %v2303_v20 = vpack.c.bf16 %v1227_v18, %v1226_v17  ;;  %v2139_v0 = vld [vmem:[%s3627_s10 + $0x5] ss:$8 sm:$0x3] }
  0x6a   : > { %2322 = vmatpush3.bf16.msra.mxu0 %v2321_v23  ;;  %v1210_v23 = vld [vmem:[%s3629_s12 + $0x50] sm:$0xff] }
  0xa4   : > { %v528_v26 = vpop.permute.xlu0 %527 }
  0xa5   : > { %v2754_v25 = vpop.permute.xlu1 %743 }
  0xa8   : > { %v533_v29 = vpop.permute.xlu0 %532 }
  0xa9   : > { %v688_v27 = vpop.permute.xlu1 %687 }
  0xad   : > { %v690_v30 = vpop.permute.xlu1 %689  ;;  %v2768_v33 = vpop.permute.xlu0 %639 }
  0xae   : > { %v2762_v31 = vsel %vm661_vm2, %v688_v27, %v690_v30  ;;  %v2766_v32 = vsel %vm661_vm2, %v690_v30, %v688_v27  ;;  %v1328_v30 = vld [vmem:[%s3630_s13 + $0xa8] sm:$0xff] }
  0xb1   : > { %v2770_v34 = vpop.permute.xlu1 %776  ;;  %v818_v35 = vpop.permute.xlu0 %817 }
  0xb5   : > { %v820_v36 = vpop.permute.xlu1 %819 }
  0xb6   : > { %v2775_v37 = vsel %vm799_vm3, %v818_v35, %v820_v36  ;;  %v2779_v38 = vsel %vm799_vm3, %v820_v36, %v818_v35  ;;  %v1204_v35 = vld [vmem:[%s3629_s12 + $0x20] sm:$0xff] }
  0xb9   : > { %v2952_v4 = vpop.permute.xlu1 %747 }
  0xfe   : > { %v615_v39 = vpop.f32.mrb[0].mxu0 }
  0xff   : > { %v616_v40 = vadd.f32 %v615_v39, %v528_v26  ;;  %v617_v41 = vpop.f32.mrb[1].mxu0  ;;  %v1205_v39 = vld [vmem:[%s3629_s12 + $0x28] sm:$0xff] }
 0x100   : > { %v618_v45 = vadd.f32 %v617_v41, %v528_v26  ;;  %v1221_v26 = vld [vmem:[%s3629_s12 + $0xa8] sm:$0xff] }
 0x101   : > { %v626_v42 = vmax.f32 %v616_v40, 0.0  ;;  %v2291_v27 = vpack.c.bf16 %v1221_v26, %v1220_v24  ;;  %v1311_v40 = vld [vmem:[%s3630_s13 + $0x20] sm:$0xff]  ;;  %v1312_v41 = vld [vmem:[%s3630_s13 + $0x28] sm:$0xff]  ;;  %v2335_v24 = vpack.c.bf16 %v1334_v22, %v1333_v19  ;;  %v1211_v26 = vld [vmem:[%s3629_s12 + $0x58] sm:$0xff] }
 0x102   : > { %v621_v43 = vpop.f32.mrb[2].mxu0  ;;  %v627_v47 = vmax.f32 %v618_v45, 0.0  ;;  %v1222_v45 = vld [vmem:[%s3629_s12 + $0xb0] sm:$0xff] }
 0x103   : > { %v2781_v44 = vmin.f32 %v626_v42, 6.0  ;;  %v623_v46 = vpop.f32.mrb[3].mxu0  ;;  %v622_v49 = vadd.f32 %v621_v43, %v533_v29  ;;  %2292 = vmatprep.subr.bf16.mxu1 %v2291_v27  ;;  %v2293_v42 = vpack.c.bf16 %v1205_v39, %v1204_v35  ;;  %v2325_v43 = vpack.c.bf16 %v1312_v41, %v1311_v40  ;;  %v1317_v27 = vld [vmem:[%s3630_s13 + $0x50] sm:$0xff]  ;;  %v1229_v39 = vld [vmem:[%s3629_s12 + $0xe8] sm:$0xff]  ;;  %v1335_v40 = vld [vmem:[%s3630_s13 + $0xe0] sm:$0xff] }
 0x104   : > { %v2791_v48 = vmin.f32 %v627_v47, 6.0  ;;  %v624_v52 = vadd.f32 %v623_v46, %v533_v29  ;;  %v1327_v29 = vld [vmem:[%s3630_s13 + $0xa0] sm:$0xff]  ;;  %v1223_v46 = vld [vmem:[%s3629_s12 + $0xb8] sm:$0xff] }
 0x105   : > { %921 = vrot.lane.b32.xlu1 %v2781_v44, %s3641_s18  ;;  %651 = vrot.lane.b32.xlu0 %v2781_v44, %s3652_s21  ;;  %v628_v50 = vmax.f32 %v622_v49, 0.0  ;;  %v2323_v36 = vpack.c.bf16 %v1328_v30, %v1327_v29  ;;  %v2295_v47 = vpack.c.bf16 %v1223_v46, %v1222_v45  ;;  %v1329_v49 = vld [vmem:[%s3630_s13 + $0xb0] sm:$0xff]  ;;  %v1318_v29 = vld [vmem:[%s3630_s13 + $0x58] sm:$0xff]  ;;  %v2305_v30 = vpack.c.bf16 %v1211_v26, %v1210_v23 }
 0x106   : > { %v629_v59 = vmax.f32 %v624_v52, 0.0  ;;  %2294 = vmatpush3.bf16.msra.mxu1 %v2293_v42  ;;  %v1206_v52 = vld [vmem:[%s3629_s12 + $0x30] sm:$0xff]  ;;  %v2337_v35 = vpack.c.bf16 %v1318_v29, %v1317_v27  ;;  %v1336_v42 = vld [vmem:[%s3630_s13 + $0xe8] sm:$0xff]  ;;  %v1212_v46 = vld [vmem:[%s3629_s12 + $0x60] sm:$0xff] }
 0x107   : > { %v2817_v51 = vmin.f32 %v628_v50, 6.0  ;;  %2324 = vmatprep.subr.bf16.mxu0 %v2323_v36  ;;  %v1330_v50 = vld [vmem:[%s3630_s13 + $0xb8] sm:$0xff]  ;;  %2296 = vmatprep.subr.bf16.mxu1 %v2295_v47  ;;  %v2297_v57 = vpack.c.bf16 %v1207_v54, %v1206_v52  ;;  %v1228_v36 = vld [vmem:[%s3629_s12 + $0xe0] sm:$0xff]  ;;  %v2339_v45 = vpack.c.bf16 %v1336_v42, %v1335_v40  ;;  %v1213_v47 = vld [vmem:[%s3629_s12 + $0x68] sm:$0xff] }
 0x108   : > { %v2866_v15 = vmin.f32 %v629_v59, 6.0  ;;  %2326 = vmatpush3.bf16.msra.mxu0 %v2325_v43  ;;  %v2327_v53 = vpack.c.bf16 %v1330_v50, %v1329_v49  ;;  %v1224_v59 = vld [vmem:[%s3629_s12 + $0xc0] sm:$0xff]  ;;  %v2307_v41 = vpack.c.bf16 %v1229_v39, %v1228_v36  ;;  %v3006_v43 = vpop.permute.xlu1 %780  ;;  %v2309_v50 = vpack.c.bf16 %v1213_v47, %v1212_v46  ;;  %v1320_v52 = vld [vmem:[%s3630_s13 + $0x68] sm:$0xff]  ;;  %v1230_v54 = vld [vmem:[%s3629_s12 + $0xf0] sm:$0xff] }
 0x109   : > { %934 = vrot.lane.b32.xlu1 %v2781_v44, %s3645_s23  ;;  %666 = vrot.lane.b32.xlu0 %v2781_v44, %s3647_s30  ;;  %v2299_v61 = vpack.c.bf16 %v1225_v60, %v1224_v59  ;;  %v1319_v49 = vld [vmem:[%s3630_s13 + $0x60] sm:$0xff]  ;;  %v2311_v56 = vpack.c.bf16 %v1231_v55, %v1230_v54  ;;  %v1214_v59 = vld [vmem:[%s3629_s12 + $0x70] sm:$0xff] }
 0x10a   : > { %2328 = vmatprep.subr.bf16.mxu0 %v2327_v53  ;;  %2298 = vmatpush3.bf16.msra.mxu1 %v2297_v57  ;;  %v2341_v53 = vpack.c.bf16 %v1320_v52, %v1319_v49  ;;  %v1337_v57 = vld [vmem:[%s3630_s13 + $0xf0] sm:$0xff]  ;;  %v2138_v26 = vld [vmem:[%s3628_s11 + $0x1] ss:$8 sm:$0x3] }
 0x10b   : > { %2300 = vmatprep.subr.bf16.mxu1 %v2299_v61  ;;  %v702_v36 = vrot.slane %v2138_v26, %v2714_v10 }
 0x10c   : > { %2330 = vmatpush3.bf16.msra.mxu0 %v2329_v58  ;;  %v1338_v58 = vld [vmem:[%s3630_s13 + $0xf8] sm:$0xff]  ;;  %v3039_v60 = vpop.permute.xlu1 %906 }
 0x10d   : > { %655 = vrot.lane.b32.xlu1 %v2791_v48, %s3652_s21  ;;  %791 = vrot.lane.b32.xlu0 %v2781_v44, %s3651_s20  ;;  %v2343_v61 = vpack.c.bf16 %v1338_v58, %v1337_v57  ;;  %vm704_vm5 = vcmp.eq.s32.totalorder %v2766_v32, %v702_v36 }
 0x10e   : > { %2332 = vmatprep.subr.bf16.mxu0 %v2331_v6  ;;  %2302 = vmatpush3.bf16.msra.mxu1 %v2301_v13  ;;  %v2313_v6 = vpack.c.bf16 %v1215_v62, %v1214_v59  ;;  %v3058_v13 = vpop.permute.xlu0 %644 }
 0x10f   : > { %2304 = vmatprep.subr.bf16.mxu1 %v2303_v20 }
 0x110   : > { %2334 = vmatpush3.bf16.msra.mxu0 %v2333_v14  ;;  %v950_v11 = vpop.permute.xlu1 %949 }
 0x111   : > { %670 = vrot.lane.b32.xlu1 %v2791_v48, %s3647_s30  ;;  %804 = vrot.lane.b32.xlu0 %v2781_v44, %s3649_s27  ;;  %s3677_s30 = smov 15  }
 0x112   : > { %2336 = vmatprep.subr.bf16.mxu0 %v2335_v24  ;;  %2306 = vmatpush3.bf16.msra.mxu1 %v2305_v30  ;;  %v3063_v14 = vpop.permute.xlu0 %873  ;;  %v698_v30 = vrot.slane %v2138_v26, %v2706_v8 }
 0x113   : > { %2308 = vmatprep.subr.bf16.mxu1 %v2307_v41  ;;  %v2144_v41 = vld [vmem:[%s3628_s11 + $0x3] ss:$8 sm:$0x3] }
 0x114   : > { %2338 = vmatpush3.bf16.msra.mxu0 %v2337_v35  ;;  %v3065_v17 = vpop.permute.xlu1 %1003  ;;  %v2141_v35 = vld [vmem:[%s3628_s11 + $0x2] ss:$8 sm:$0x3]  ;;  %vm703_vm4 = vcmp.eq.s32.totalorder %v2762_v31, %v698_v30  ;;  %v958_v47 = vrot.slane %v2144_v41, %v2706_v8  ;;  %v706_v31 = vsel %vm704_vm5, 1, %v2529_v3  ;;  %v3155_v30 = vrot.slane %v2139_v0, %v2706_v8 }
 0x115   : > { %795 = vrot.lane.b32.xlu1 %v2791_v48, %s3651_s20  ;;  %1051 = vrot.lane.b32.xlu0 %v2781_v44, %s3639_s19  ;;  %v828_v39 = vrot.slane %v2141_v35, %v2706_v8  ;;  %v832_v40 = vrot.slane %v2141_v35, %v2714_v10  ;;  %v705_v46 = vsel %vm703_vm4, 1, %v2529_v3  ;;  %v714_v55 = vrot.slane %v706_v31, %v2706_v8 }
 0x116   : > { %2340 = vmatprep.subr.bf16.mxu0 %v2339_v45  ;;  %2310 = vmatpush3.bf16.msra.mxu1 %v2309_v50  ;;  %v948_v18 = vpop.permute.xlu0 %947  ;;  %v710_v52 = vrot.slane %v705_v46, %v2706_v8  ;;  %v3158_v35 = vrot.slane %v2139_v0, %v2714_v10  ;;  %v647_v0 = vmul.f32 %v2768_v33, %v2781_v44  ;;  %vm812_vm5 = vcmp.lt.s32.totalorder %v2757_v28, 15 }
 0x117   : > { %2312 = vmatprep.subr.bf16.mxu1 %v2311_v56  ;;  %vm833_vm7 = vcmp.eq.s32.totalorder %v2775_v37, %v828_v39  ;;  %vm834_vm8 = vcmp.eq.s32.totalorder %v2779_v38, %v832_v40  ;;  %v951_v49 = vsel %vm929_vm6, %v948_v18, %v950_v11  ;;  %v962_v37 = vrot.slane %v2144_v41, %v2714_v10  ;;  %v2147_v38 = vld [vmem:[%s3628_s11 + $0x4] ss:$8 sm:$0x3] }
 0x118   : > { %2342 = vmatpush3.bf16.msra.mxu0 %v2341_v53  ;;  %v3071_v19 = vpop.permute.xlu1 %1036  ;;  %v835_v53 = vsel %vm833_vm7, 1, %v2529_v3  ;;  %v836_v54 = vsel %vm834_vm8, 1, %v2529_v3  ;;  %v952_v56 = vsel %vm929_vm6, %v950_v11, %v948_v18  ;;  %vm963_vm9 = vcmp.eq.s32.totalorder %v951_v49, %v958_v47 }
 0x119   : > { %808 = vrot.lane.b32.xlu1 %v2791_v48, %s3649_s27  ;;  %1064 = vrot.lane.b32.xlu0 %v2781_v44, %s3643_s17  ;;  %s3682_s27 = smov 111   ;;  %v840_v57 = vrot.slane %v835_v53, %v2706_v8  ;;  %v844_v58 = vrot.slane %v836_v54, %v2706_v8  ;;  %v1088_v59 = vrot.slane %v2147_v38, %v2706_v8  ;;  %vm3145_vm12 = vcmp.eq.s32.totalorder %v710_v52, 1 }
 0x11a   : > { %2344 = vmatprep.subr.bf16.mxu0 %v2343_v61  ;;  %2314 = vmatpush3.bf16.msra.mxu1 %v2313_v6  ;;  %v1092_v61 = vrot.slane %v2147_v38, %v2714_v10  ;;  %v2140_v6 = vld [vmem:[%s3627_s10 + $0x3] ss:$8 sm:$0x3]  ;;  %vm964_vm11 = vcmp.eq.s32.totalorder %v952_v56, %v962_v37  ;;  %vm3149_vm13 = vcmp.eq.s32.totalorder %v714_v55, 1  ;;  %v650_v18 = vmul.f32 %v3058_v13, %v2866_v15 }
 0x11b   : > { %v3161_v36 = vrot.slane %v2140_v6, %v2706_v8  ;;  %vm3177_vm1 = vcmp.eq.s32.totalorder %v840_v57, 1  ;;  %vm3181_vm4 = vcmp.eq.s32.totalorder %v844_v58, 1 }
 0x11c   : > { %2346 = vmatpush3.bf16.msra.mxu0 %v2345_v7  ;;  %v3139_v7 = vsel %vm963_vm9, 1, %v2529_v3 }
 0x11d   : > { %1055 = vrot.lane.b32.xlu1 %v2791_v48, %s3639_s19  ;;  %925 = vrot.lane.b32.xlu0 %v2791_v48, %s3641_s18  ;;  %s3684_s19 = smov 17   ;;  %v970_v39 = vrot.slane %v3139_v7, %v2706_v8 }
 0x11f   : > { %vm3264_vm7 = vcmp.eq.s32.totalorder %v970_v39, 1 }
 0x121   : > { %1068 = vrot.lane.b32.xlu1 %v2791_v48, %s3643_s17  ;;  %938 = vrot.lane.b32.xlu0 %v2791_v48, %s3645_s23  ;;  %s512_s17 = sand.u32 1, %s2518_s22  }
 0x122   : > { %s2054_s29 = scalar_lea.sflag [#allocation3], %s512_s17 }
 0x125   : > { %793 = vrot.lane.b32.xlu1 %v2817_v51, %s3651_s20  ;;  %653 = vrot.lane.b32.xlu0 %v2817_v51, %s3652_s21  ;;  %s3680_s21 = smov 112  }
 0x129   : > { %806 = vrot.lane.b32.xlu1 %v2817_v51, %s3677_s30  ;;  %668 = vrot.lane.b32.xlu0 %v2817_v51, %s3678_s1 }
 0x12d   : > { %657 = vrot.lane.b32.xlu1 %v2866_v15, %s3679_s2  ;;  %923 = vrot.lane.b32.xlu0 %v2817_v51, %s3680_s21 }
 0x131   : > { %672 = vrot.lane.b32.xlu1 %v2866_v15, %s3678_s1  ;;  %936 = vrot.lane.b32.xlu0 %v2817_v51, %s3681_s3  ;;  %s3683_s1 = smov 113  }
 0x135   : > { %1053 = vrot.lane.b32.xlu1 %v2817_v51, %s3682_s27  ;;  %797 = vrot.lane.b32.xlu0 %v2866_v15, %s3683_s1 }
 0x139   : > { %927 = vrot.lane.b32.xlu1 %v2866_v15, %s3680_s21  ;;  %810 = vrot.lane.b32.xlu0 %v2866_v15, %s3677_s30  ;;  %s2131_s21 = sshll.u32 %s512_s17, 3 }
 0x13a   : > { %s514_s20 = scalar_lea.vmem [#allocation2], %s2131_s21 }
 0x13b   : > { %s2068_s30 = sshll.u32 %s514_s20, 4  ;;  %s3577_s30 = int_to_ptr.vmem [resolvable:$true] %s2068_s30 }
 0x13d   : > { %940 = vrot.lane.b32.xlu1 %v2866_v15, %s3681_s3  ;;  %1181 = vperm.xlu0 %2439, %v2687_v2  }
 0x141   : > { %1057 = vrot.lane.b32.xlu1 %v2866_v15, %s3682_s27  ;;  %1066 = vrot.lane.b32.xlu0 %v2817_v51, %s3684_s19 }
 0x145   : > { %1070 = vrot.lane.b32.xlu1 %v2866_v15, %s3684_s19  ;;  %1185 = vperm.xlu0 %2439, %v2696_v5   ;;  %s2170_s19 = sshll.u32 %s2655_s25, 7  ;;  %s2548_s25 = smov [#allocation2]  }
 0x146   : > { %s3575_s28 = scalar_lea.hbm %s3633_s16, %s2170_s19  ;;  %s2468_s3 = sshll.u32 %s2548_s25, 4  ;;  %s2469_s3 = int_to_ptr.vmem [resolvable:$false] %s2468_s3 }
 0x147   : > { %s2470_s18 = scalar_lea.vmem %s2469_s3, 256  ;;  %p2471_p0 = scmp.lt.s32.totalorder %s3577_s30, %s2469_s3 }
 0x149   : > { %1418 = vperm.xlu1 %2438, %v1415_v9   ;;  %2440 = vset.pattern.permute.xlu0 %v2537_v21 }
 0x14a   : > { %1578 = vperm.xlu0 %2440, %v2687_v2  }
 0x14d   : > { %2441 = vset.pattern.permute.xlu1 %v2532_v16 }
 0x14e   : > { %1682 = vperm.xlu1 %2441, %v2687_v2   ;;  %2443 = vset.pattern.permute.xlu0 %v2532_v16  ;;  %v3074_v2 = vpop.permute.xlu0 %877  ;;  %v1078_v16 = vpop.permute.xlu1 %1077 }
 0x14f   : > { %1686 = vperm.xlu0 %2443, %v2696_v5  }
 0x152   : > { %2442 = vset.pattern.permute.xlu1 %v2537_v21  ;;  %v3076_v20 = vpop.permute.xlu1 %1007  ;;  %v3078_v22 = vpop.permute.xlu0 %910 }
 0x153   : > { %1582 = vperm.xlu1 %2442, %v2696_v5   ;;  %2445 = vset.pattern.permute.xlu0 %v2529_v3 }
 0x156   : > { %v3080_v23 = vpop.permute.xlu1 %1040  ;;  %v1080_v24 = vpop.permute.xlu0 %1079 }
 0x157   : > { %2444 = vset.pattern.permute.xlu1 %v2529_v3  ;;  %v1081_v9 = vsel %vm1059_vm10, %v1078_v16, %v1080_v24  ;;  %v1082_v11 = vsel %vm1059_vm10, %v1080_v24, %v1078_v16  ;;  %v3164_v16 = vrot.slane %v2140_v6, %v2714_v10  ;;  %v966_v24 = vsel %vm964_vm11, 1, %v2529_v3 }
 0x158   : > { %vm3169_vm15 = vcmp.eq.s32.totalorder %v1081_v9, %v1088_v59  ;;  %vm3173_vm0 = vcmp.eq.s32.totalorder %v1082_v11, %v1092_v61  ;;  %v2142_v61 = vld [vmem:[%s3627_s10 + $0x6] ss:$8 sm:$0x3]  ;;  %v974_v6 = vrot.slane %v966_v24, %v2706_v8 }
 0x159   : > { %v1095_v7 = vsel %vm3169_vm15, 1, %v2529_v3  ;;  %v1096_v9 = vsel %vm3173_vm0, 1, %v2529_v3  ;;  %v3226_v44 = vrot.slane %v2142_v61, %v2706_v8  ;;  %v3229_v24 = vrot.slane %v2142_v61, %v2714_v10 }
 0x15a   : > { %v3082_v21 = vpop.permute.xlu1 %1165  ;;  %v3084_v5 = vpop.permute.xlu0 %1133  ;;  %vm3268_vm8 = vcmp.eq.s32.totalorder %v974_v6, 1  ;;  %v2148_v6 = vld [vmem:[%s3627_s10 + $0x10] ss:$8 sm:$0x3]  ;;  %vm1072_vm15 = vcmp.lt.s32.totalorder %v2757_v28, 17  ;;  %vm942_vm0 = vcmp.lt.s32.totalorder %v2757_v28, 16 }
 0x15e   : > { %v3089_v27 = vpop.permute.xlu1 %1169  ;;  %v3091_v29 = vpop.permute.xlu0 %1137 }
 0x15f   : > { %3685 = vst [vmem:[#allocation12_spill] sm:$0xff] %v3089_v27  ;;  %3686 = vst [vmem:[#allocation13_spill] sm:$0xff] %v3091_v29 }
 0x177   : > { %v3106_v42 = vpop.permute.xlu1 %921  ;;  %v652_v45 = vpop.permute.xlu0 %651 }
 0x17b   : > { %v3115_v50 = vpop.permute.xlu1 %934  ;;  %v667_v32 = vpop.permute.xlu0 %666 }
 0x17f   : > { %v656_v62 = vpop.permute.xlu1 %655  ;;  %v792_v63 = vpop.permute.xlu0 %791 }
 0x180   : > { %v662_v52 = vsel %vm661_vm2, %v652_v45, %v656_v62  ;;  %v664_v53 = vsel %vm661_vm2, %v656_v62, %v652_v45  ;;  %v2143_v62 = vld [vmem:[%s3627_s10 + $0x2] ss:$8 sm:$0x3] }
 0x181   : > { %v3232_v40 = vrot.slane %v2143_v62, %v2706_v8  ;;  %v3235_v3 = vrot.slane %v2143_v62, %v2714_v10 }
 0x183   : > { %v671_v46 = vpop.permute.xlu1 %670  ;;  %v805_v47 = vpop.permute.xlu0 %804 }
 0x184   : > { %v675_v54 = vsel %vm674_vm14, %v667_v32, %v671_v46  ;;  %v677_v37 = vsel %vm674_vm14, %v671_v46, %v667_v32 }
 0x185   : > { %v717_v38 = vsel %vm3145_vm12, %v662_v52, %v677_v37  ;;  %v718_v55 = vsel %vm3149_vm13, %v664_v53, %v675_v54  ;;  %v721_v56 = vsel %vm3145_vm12, %v677_v37, %v662_v52  ;;  %v722_v57 = vsel %vm3149_vm13, %v675_v54, %v664_v53 }
 0x186   : > { %v738_v45 = vmul.f32 %v3155_v30, %v717_v38  ;;  %v739_v58 = vmul.f32 %v3158_v35, %v718_v55  ;;  %v771_v59 = vmul.f32 %v3161_v36, %v721_v56  ;;  %v772_v32 = vmul.f32 %v3164_v16, %v722_v57 }
 0x187   : > { %v796_v11 = vpop.permute.xlu1 %795  ;;  %v1052_v46 = vpop.permute.xlu0 %1051  ;;  %v648_v52 = vmul.f32 %v2768_v33, %v2791_v48  ;;  %v1100_v37 = vrot.slane %v1095_v7, %v2706_v8  ;;  %v1104_v38 = vrot.slane %v1096_v9, %v2706_v8 }
 0x188   : > { %v750_v53 = vmul.f32 %v2754_v25, %v738_v45  ;;  %v751_v54 = vmul.f32 %v2754_v25, %v739_v58  ;;  %v783_v48 = vmul.f32 %v2770_v34, %v771_v59  ;;  %v784_v25 = vmul.f32 %v2770_v34, %v772_v32 }
 0x189   : > { %v800_v55 = vsel %vm799_vm3, %v792_v63, %v796_v11  ;;  %v802_v56 = vsel %vm799_vm3, %v796_v11, %v792_v63  ;;  %vm3272_vm9 = vcmp.eq.s32.totalorder %v1100_v37, 1  ;;  %vm3276_vm11 = vcmp.eq.s32.totalorder %v1104_v38, 1 }
 0x18a   : > { %v754_v41 = vadd.f32 %v750_v53, %v647_v0  ;;  %v755_v33 = vadd.f32 %v751_v54, %v648_v52  ;;  %v1148_v52 = vld [vmem:[%s3627_s10] ss:$8 sm:$0x3] }
 0x18b   : > { %v809_v57 = vpop.permute.xlu1 %808  ;;  %v1065_v45 = vpop.permute.xlu0 %1064  ;;  %v3290_v37 = vrot.slane %v1148_v52, %v2714_v10 }
 0x18c   : > { %v787_v58 = vadd.f32 %v783_v48, %v754_v41  ;;  %v788_v61 = vadd.f32 %v784_v25, %v755_v33  ;;  %v813_v62 = vsel %vm812_vm5, %v805_v47, %v809_v57  ;;  %v815_v34 = vsel %vm812_vm5, %v809_v57, %v805_v47 }
 0x18d   : > { %v847_v59 = vsel %vm3177_vm1, %v800_v55, %v815_v34  ;;  %v848_v32 = vsel %vm3181_vm4, %v802_v56, %v813_v62  ;;  %v851_v0 = vsel %vm3177_vm1, %v815_v34, %v800_v55  ;;  %v852_v63 = vsel %vm3181_vm4, %v813_v62, %v802_v56  ;;  %3707 = vst [vmem:[#allocation14_spill] sm:$0xff] %v3290_v37  ;;  %v2145_v34 = vld [vmem:[%s3627_s10 + $0x7] ss:$8 sm:$0x3] }
 0x18e   : > { %v868_v7 = vmul.f32 %v3226_v44, %v847_v59  ;;  %v869_v9 = vmul.f32 %v3229_v24, %v848_v32  ;;  %v901_v11 = vmul.f32 %v3232_v40, %v851_v0  ;;  %v902_v47 = vmul.f32 %v3235_v3, %v852_v63 }
 0x18f   : > { %v1056_v41 = vpop.permute.xlu1 %1055  ;;  %v926_v33 = vpop.permute.xlu0 %925  ;;  %v3287_v56 = vrot.slane %v1148_v52, %v2706_v8  ;;  %v3303_v0 = vrot.slane %v2148_v6, %v2706_v8 }
 0x190   : > { %v880_v55 = vmul.f32 %v3063_v14, %v868_v7  ;;  %v881_v39 = vmul.f32 %v3063_v14, %v869_v9  ;;  %v913_v62 = vmul.f32 %v3039_v60, %v901_v11  ;;  %v914_v14 = vmul.f32 %v3039_v60, %v902_v47  ;;  %v2146_v60 = vld [vmem:[%s3627_s10 + $0x1] ss:$8 sm:$0x3] }
 0x191   : > { %v1060_v59 = vsel %vm1059_vm10, %v1052_v46, %v1056_v41  ;;  %v1062_v32 = vsel %vm1059_vm10, %v1056_v41, %v1052_v46  ;;  %v3320_v41 = vrot.slane %v2145_v34, %v2706_v8 }
 0x192   : > { %v884_v38 = vadd.f32 %v880_v55, %v787_v58  ;;  %v885_v57 = vadd.f32 %v881_v39, %v788_v61  ;;  %v3306_v58 = vrot.slane %v2148_v6, %v2714_v10  ;;  %v3323_v55 = vrot.slane %v2145_v34, %v2714_v10 }
 0x193   : > { %v1069_v61 = vpop.permute.xlu1 %1068  ;;  %v939_v63 = vpop.permute.xlu0 %938 }
 0x194   : > { %v917_v7 = vadd.f32 %v913_v62, %v884_v38  ;;  %v918_v9 = vadd.f32 %v914_v14, %v885_v57  ;;  %v1073_v11 = vsel %vm1072_vm15, %v1065_v45, %v1069_v61  ;;  %v1075_v46 = vsel %vm1072_vm15, %v1069_v61, %v1065_v45  ;;  %v3708_v28 = vld [vmem:[#allocation14_spill] sm:$0xff] }
 0x195   : > { %v1111_v47 = vsel %vm3272_vm9, %v1075_v46, %v1060_v59  ;;  %v1112_v52 = vsel %vm3276_vm11, %v1073_v11, %v1062_v32  ;;  %v3328_v38 = vrot.slane %v2146_v60, %v2706_v8  ;;  %v3331_v45 = vrot.slane %v2146_v60, %v2714_v10 }
 0x196   : > { %v1160_v39 = vmul.f32 %v3287_v56, %v1111_v47  ;;  %v1161_v6 = vmul.f32 %v3290_v37, %v1112_v52  ;;  %v930_v57 = vsel %vm929_vm6, %v3106_v42, %v926_v33  ;;  %v932_v62 = vsel %vm929_vm6, %v926_v33, %v3106_v42 }
 0x197   : > { %v943_v14 = vsel %vm942_vm0, %v3115_v50, %v939_v63  ;;  %v945_v8 = vsel %vm942_vm0, %v939_v63, %v3115_v50  ;;  %v3345_v34 = vpop.permute.xlu1 %793  ;;  %v654_v10 = vpop.permute.xlu0 %653  ;;  %v1107_v61 = vsel %vm3272_vm9, %v1060_v59, %v1075_v46  ;;  %v1108_v60 = vsel %vm3276_vm11, %v1062_v32, %v1073_v11 }
 0x198   : > { %v977_v42 = vsel %vm3264_vm7, %v930_v57, %v945_v8  ;;  %v978_v33 = vsel %vm3268_vm8, %v932_v62, %v943_v14  ;;  %v981_v47 = vsel %vm3264_vm7, %v945_v8, %v930_v57  ;;  %v982_v50 = vsel %vm3268_vm8, %v943_v14, %v932_v62 }
 0x199   : > { %v998_v63 = vmul.f32 %v3320_v41, %v977_v42  ;;  %v999_v52 = vmul.f32 %v3323_v55, %v978_v33  ;;  %v1031_v59 = vmul.f32 %v3328_v38, %v981_v47  ;;  %v1032_v32 = vmul.f32 %v3331_v45, %v982_v50 }
 0x19a   : > { %v1172_v11 = vmul.f32 %v3082_v21, %v1160_v39  ;;  %v1173_v46 = vmul.f32 %v3082_v21, %v1161_v6  ;;  %v1128_v1 = vmul.f32 %v3303_v0, %v1107_v61  ;;  %v1129_v12 = vmul.f32 %v3306_v58, %v1108_v60 }
 0x19b   : > { %v1010_v57 = vmul.f32 %v3065_v17, %v998_v63  ;;  %v1011_v62 = vmul.f32 %v3065_v17, %v999_v52  ;;  %v807_v14 = vpop.permute.xlu1 %806  ;;  %v669_v8 = vpop.permute.xlu0 %668  ;;  %v1043_v47 = vmul.f32 %v3071_v19, %v1031_v59  ;;  %v1044_v50 = vmul.f32 %v3071_v19, %v1032_v32 }
 0x19c   : > { %v1140_v39 = vmul.f32 %v3084_v5, %v1128_v1  ;;  %v1141_v21 = vmul.f32 %v3084_v5, %v1129_v12 }
 0x19d   : > { %v1014_v42 = vadd.f32 %v1010_v57, %v917_v7  ;;  %v1015_v33 = vadd.f32 %v1011_v62, %v918_v9  ;;  %v649_v62 = vmul.f32 %v3058_v13, %v2817_v51 }
 0x19f   : > { %v658_v6 = vpop.permute.xlu1 %657  ;;  %v924_v61 = vpop.permute.xlu0 %923  ;;  %v1048_v27 = vadd.f32 %v1044_v50, %v1015_v33  ;;  %v1047_v60 = vadd.f32 %v1043_v47, %v1014_v42 }
 0x1a0   : > { %v663_v9 = vsel %vm661_vm2, %v654_v10, %v658_v6  ;;  %v665_v1 = vsel %vm661_vm2, %v658_v6, %v654_v10  ;;  %vm2547_vm2 = vmmov 0  }
 0x1a1   : > { %v1145_v29 = vadd.f32 %v1141_v21, %v1048_v27  ;;  %v1144_v63 = vadd.f32 %v1140_v39, %v1047_v60 }
 0x1a3   : > { %v673_v37 = vpop.permute.xlu1 %672  ;;  %v937_v17 = vpop.permute.xlu0 %936  ;;  %v3373_v52 = vadd.f32 %v1173_v46, %v1145_v29  ;;  %v3375_v7 = vadd.f32 %v1172_v11, %v1144_v63 }
 0x1a4   : > { %v676_v12 = vsel %vm674_vm14, %v669_v8, %v673_v37  ;;  %v678_v19 = vsel %vm674_vm14, %v673_v37, %v669_v8 }
 0x1a5   : > { %v719_v5 = vsel %vm3145_vm12, %v663_v9, %v678_v19  ;;  %v720_v27 = vsel %vm3149_vm13, %v665_v1, %v676_v12  ;;  %v723_v29 = vsel %vm3145_vm12, %v678_v19, %v663_v9  ;;  %v724_v59 = vsel %vm3149_vm13, %v676_v12, %v665_v1 }
 0x1a6   : > { %v740_v10 = vmul.f32 %v3155_v30, %v719_v5  ;;  %v741_v32 = vmul.f32 %v3158_v35, %v720_v27  ;;  %v773_v11 = vmul.f32 %v3161_v36, %v723_v29  ;;  %v774_v37 = vmul.f32 %v3164_v16, %v724_v59 }
 0x1a7   : > { %v3397_v46 = vpop.permute.xlu1 %1053  ;;  %v798_v57 = vpop.permute.xlu0 %797 }
 0x1a8   : > { %v752_v26 = vmul.f32 %v2952_v4, %v740_v10  ;;  %v753_v8 = vmul.f32 %v2952_v4, %v741_v32  ;;  %v785_v35 = vmul.f32 %v3006_v43, %v773_v11  ;;  %v786_v36 = vmul.f32 %v3006_v43, %v774_v37 }
 0x1a9   : > { %v801_v51 = vsel %vm799_vm3, %v3345_v34, %v798_v57  ;;  %v803_v15 = vsel %vm799_vm3, %v798_v57, %v3345_v34  ;;  %vm1421_vm3 = vcmask 130048  }
 0x1aa   : > { %v756_v30 = vadd.f32 %v752_v26, %v649_v62  ;;  %v757_v42 = vadd.f32 %v753_v8, %v650_v18 }
 0x1ab   : > { %v928_v16 = vpop.permute.xlu1 %927  ;;  %v811_v33 = vpop.permute.xlu0 %810 }
 0x1ac   : > { %v789_v47 = vadd.f32 %v785_v35, %v756_v30  ;;  %v790_v50 = vadd.f32 %v786_v36, %v757_v42  ;;  %v814_v4 = vsel %vm812_vm5, %v807_v14, %v811_v33  ;;  %v816_v13 = vsel %vm812_vm5, %v811_v33, %v807_v14 }
 0x1ad   : > { %v849_v43 = vsel %vm3177_vm1, %v801_v51, %v816_v13  ;;  %v850_v39 = vsel %vm3181_vm4, %v803_v15, %v814_v4  ;;  %v853_v21 = vsel %vm3177_vm1, %v816_v13, %v801_v51  ;;  %v854_v6 = vsel %vm3181_vm4, %v814_v4, %v803_v15 }
 0x1ae   : > { %v870_v34 = vmul.f32 %v3226_v44, %v849_v43  ;;  %v871_v60 = vmul.f32 %v3229_v24, %v850_v39  ;;  %v903_v63 = vmul.f32 %v3232_v40, %v853_v21  ;;  %v904_v14 = vmul.f32 %v3235_v3, %v854_v6  ;;  %v3709_v39 = vld [vmem:[#allocation13_spill] sm:$0xff]  ;;  %v3710_v6 = vld [vmem:[#allocation12_spill] sm:$0xff] }
 0x1af   : > { %v941_v9 = vpop.permute.xlu1 %940  ;;  %v931_v1 = vsel %vm929_vm6, %v924_v61, %v928_v16  ;;  %v933_v12 = vsel %vm929_vm6, %v928_v16, %v924_v61  ;;  %vm1585_vm6 = vcmask 64512  }
 0x1b0   : > { %v944_v31 = vsel %vm942_vm0, %v937_v17, %v941_v9  ;;  %v946_v49 = vsel %vm942_vm0, %v941_v9, %v937_v17  ;;  %v882_v44 = vmul.f32 %v3074_v2, %v870_v34  ;;  %v883_v24 = vmul.f32 %v3074_v2, %v871_v60 }
 0x1b1   : > { %v915_v40 = vmul.f32 %v3078_v22, %v903_v63  ;;  %v916_v3 = vmul.f32 %v3078_v22, %v904_v14  ;;  %v979_v19 = vsel %vm3264_vm7, %v931_v1, %v946_v49  ;;  %v980_v61 = vsel %vm3268_vm8, %v933_v12, %v944_v31 }
 0x1b2   : > { %v983_v5 = vsel %vm3264_vm7, %v946_v49, %v931_v1  ;;  %v984_v17 = vsel %vm3268_vm8, %v944_v31, %v933_v12  ;;  %v886_v27 = vadd.f32 %v882_v44, %v789_v47  ;;  %v887_v29 = vadd.f32 %v883_v24, %v790_v50 }
 0x1b3   : > { %v1000_v2 = vmul.f32 %v3320_v41, %v979_v19  ;;  %v1001_v59 = vmul.f32 %v3323_v55, %v980_v61  ;;  %v1033_v22 = vmul.f32 %v3328_v38, %v983_v5  ;;  %v1034_v10 = vmul.f32 %v3331_v45, %v984_v17  ;;  %v1058_v8 = vpop.permute.xlu1 %1057 }
 0x1b4   : > { %v919_v32 = vadd.f32 %v915_v40, %v886_v27  ;;  %v920_v11 = vadd.f32 %v916_v3, %v887_v29  ;;  %v1063_v35 = vsel %vm1059_vm10, %v1058_v8, %v3397_v46  ;;  %v2546_v44 = vmov 0.0|0.0  }
 0x1b5   : > { %v1012_v37 = vmul.f32 %v3076_v20, %v1000_v2  ;;  %v1013_v53 = vmul.f32 %v3076_v20, %v1001_v59  ;;  %v1045_v54 = vmul.f32 %v3080_v23, %v1033_v22  ;;  %v1046_v18 = vmul.f32 %v3080_v23, %v1034_v10  ;;  %2347 = vmatprep.subr.bf16.mxu1 %v2546_v44 }
 0x1b6   : > { %v1061_v20 = vsel %vm1059_vm10, %v3397_v46, %v1058_v8  ;;  %2350 = vmatprep.subr.bf16.mxu0 %v2546_v44  ;;  %v3711_v24 = vmov 0.0  }
 0x1b7   : > { %v1016_v57 = vadd.f32 %v1012_v37, %v919_v32  ;;  %v1017_v62 = vadd.f32 %v1013_v53, %v920_v11  ;;  %v1071_v36 = vpop.permute.xlu1 %1070  ;;  %v1414_v37 = vld [vmem:[%s3621_s4] sm:$0xff] }
 0x1b8   : > { %v1575_v53 = vld [vmem:[%s3623_s6] sm:$0xff] }
 0x1b9   : > { %v1049_v26 = vadd.f32 %v1045_v54, %v1016_v57  ;;  %v1050_v41 = vadd.f32 %v1046_v18, %v1017_v62  ;;  %v1679_v57 = vld [vmem:[%s3624_s7] sm:$0xff] }
 0x1bc   : > { %v1182_v55 = vpop.permute.xlu0 %1181 }
 0x1bd   : > { %v1188_v38 = vadd.f32 %v1182_v55, %v3375_v7  ;;  %v1189_v45 = vadd.f32 %v1182_v55, %v3373_v52 }
 0x1bf   : > { %v1192_v30 = vmax.f32 %v1188_v38, 0.0  ;;  %v1193_v42 = vmax.f32 %v1189_v45, 0.0 }
 0x1c0   : > { %v1067_v23 = vpop.permute.xlu0 %1066 }
 0x1c1   : > { %v3465_v16 = vmin.f32 %v1192_v30, 6.0  ;;  %v3467_v33 = vmin.f32 %v1193_v42, 6.0  ;;  %v1074_v7 = vsel %vm1072_vm15, %v1067_v23, %v1071_v36  ;;  %v1076_v52 = vsel %vm1072_vm15, %v1071_v36, %v1067_v23 }
 0x1c2   : > { %v1109_v47 = vsel %vm3272_vm9, %v1061_v20, %v1076_v52  ;;  %v1110_v50 = vsel %vm3276_vm11, %v1063_v35, %v1074_v7  ;;  %v1113_v46 = vsel %vm3272_vm9, %v1076_v52, %v1061_v20  ;;  %v1114_v51 = vsel %vm3276_vm11, %v1074_v7, %v1063_v35 }
 0x1c3   : > { %v1130_v15 = vmul.f32 %v3303_v0, %v1109_v47  ;;  %v1131_v4 = vmul.f32 %v3306_v58, %v1110_v50  ;;  %v1162_v13 = vmul.f32 %v3287_v56, %v1113_v46  ;;  %v1163_v43 = vmul.f32 %v3708_v28, %v1114_v51  ;;  %1296 = vmatprep.mubr.f32.mxu1 %v3467_v33  ;;  %v1576_v47 = vld [vmem:[%s3623_s6 + $0x8] sm:$0xff]  ;;  %v1785_v51 = vld [vmem:[%s3631_s14 + $0x18] sm:$0xff]  ;;  %v1782_v28 = vld [vmem:[%s3631_s14] sm:$0xff] }
 0x1c4   : > { %1403 = vmatprep.mubr.f32.mxu0 %v3467_v33  ;;  %1297 = vmatmul.mubr.f32.vlgmr.msra.gmra.mrb[0].mxu1 %v3465_v16  ;;  %v1186_v63 = vpop.permute.xlu0 %1185  ;;  %v1680_v50 = vld [vmem:[%s3624_s7 + $0x8] sm:$0xff] }
 0x1c5   : > { %v1142_v48 = vmul.f32 %v3709_v39, %v1130_v15  ;;  %v1143_v21 = vmul.f32 %v3709_v39, %v1131_v4  ;;  %1404 = vmatmul.mubr.f32.vlgmr.msra.gmra.mrb[4].mxu0 %v3465_v16  ;;  %v1174_v58 = vmul.f32 %v3710_v6, %v1162_v13  ;;  %v1175_v56 = vmul.f32 %v3710_v6, %v1163_v43  ;;  %v1783_v46 = vld [vmem:[%s3631_s14 + $0x8] sm:$0xff]  ;;  %v1876_v13 = vld [vmem:[%s3632_s15 + $0x18] sm:$0xff]  ;;  %v1784_v43 = vld [vmem:[%s3631_s14 + $0x10] sm:$0xff] }
 0x1c6   : > { %v1874_v15 = vld [vmem:[%s3632_s15 + $0x8] sm:$0xff]  ;;  %v2353_v4 = vpack.c.bf16 %v1785_v51, %v1783_v46  ;;  %v2463_v51 = vld [vmem:[%s2711_s26] sm:$0xff]  ;;  %s2464_s26 = scalar_lea.vmem %s3577_s30, 128 }
 0x1c7   : > { %v1146_v25 = vadd.f32 %v1142_v48, %v1049_v26  ;;  %v1147_v0 = vadd.f32 %v1143_v21, %v1050_v41  ;;  %v2357_v39 = vpack.c.bf16 %v1876_v13, %v1874_v15  ;;  %v2355_v48 = vpack.c.bf16 %v1784_v43, %v1782_v28  ;;  %v1873_v21 = vld [vmem:[%s3632_s15] sm:$0xff]  ;;  %p2465_p11 = scmp.ne.s32.totalorder %s3577_s30, %s2464_s26  ;;  %p2472_p1 = scmp.lt.s32.totalorder %s2470_s18, %s2464_s26 }
 0x1c8   : > { %v1419_v62 = vpop.permute.xlu1 %1418 }
 0x1c9   : > { %v1178_v34 = vadd.f32 %v1174_v58, %v1146_v25  ;;  %v1179_v60 = vadd.f32 %v1175_v56, %v1147_v0  ;;  %v1875_v25 = vld [vmem:[%s3632_s15 + $0x10] sm:$0xff]  ;;  %v1579_v58 = vpop.permute.xlu0 %1578  ;;  %p2466_p12 = pnand %p2465_p11, %p2672_p5  ;;  %p2473_p2 = por %p2472_p1, %p2471_p0 }
 0x1ca   : > { %v2359_v0 = vpack.c.bf16 %v1875_v25, %v1873_v21 }
 0x1cb   : > { %v1190_v14 = vadd.f32 %v1186_v63, %v1178_v34  ;;  %v1191_v9 = vadd.f32 %v1186_v63, %v1179_v60  ;;  %p2467_p13 = pneg %p2466_p12 }
 0x1cd   : > { %v1194_v1 = vmax.f32 %v1190_v14, 0.0  ;;  %v1195_v12 = vmax.f32 %v1191_v9, 0.0  ;;  %v1683_v6 = vpop.permute.xlu1 %1682  ;;  %p2474_p3 = pnand %p2473_p2, %p2467_p13 }
 0x1ce   : > { %v1687_v34 = vpop.permute.xlu0 %1686 }
 0x1cf   : > { %v3493_v31 = vmin.f32 %v1194_v1, 6.0  ;;  %v3495_v49 = vmin.f32 %v1195_v12, 6.0 }
 0x1d1   : > { %1301 = vmatprep.mubr.f32.mxu1 %v3495_v49  ;;  %1408 = vmatprep.mubr.f32.mxu0 %v3495_v49 }
 0x1d2   : > { %1302 = vmatmul.mubr.f32.gmra.mrb[2].mxu1 %v3493_v31  ;;  %1409 = vmatmul.mubr.f32.gmra.mrb[6].mxu0 %v3493_v31  ;;  %v1583_v56 = vpop.permute.xlu1 %1582 }
 0x1d3   : > { %2263 = vmatprep.mubr.msk.f32.mxu1 %vm2547_vm2, %v3711_v24  ;;  %2270 = vmatprep.mubr.msk.f32.mxu0 %vm2547_vm2, %v3711_v24 }
 0x297   : > { %v2203_v40 = vpop.f32.mrb[0].mxu1 }
 0x298   : > { %v2241_v3 = vpop.f32.mrb[4].mxu0  ;;  %v2204_v19 = vpop.f32.mrb[1].mxu1 }
 0x299   : > { %v2205_v61 = vadd.f32 %v2204_v19, %v2203_v40  ;;  %v2242_v5 = vpop.f32.mrb[5].mxu0 }
 0x29a   : > { %v2243_v17 = vadd.f32 %v2242_v5, %v2241_v3 }
 0x2a5   : > { %v2206_v27 = vpop.f32.mrb[2].mxu1  ;;  %v2244_v29 = vpop.f32.mrb[6].mxu0 }
 0x2a6   : > { %v2207_v2 = vpop.f32.mrb[3].mxu1  ;;  %v2245_v59 = vpop.f32.mrb[7].mxu0 }
 0x2a7   : > { %v2208_v22 = vadd.f32 %v2207_v2, %v2206_v27  ;;  %v2246_v10 = vadd.f32 %v2245_v59, %v2244_v29 }
 0x2a9   : > { %v2348_v32 = vpack.c.bf16 %v2208_v22, %v2205_v61  ;;  %v2351_v11 = vpack.c.bf16 %v2246_v10, %v2243_v17 }
 0x2ab   : > { %2349 = vmatpush3.bf16.msra.mxu1 %v2348_v32  ;;  %2352 = vmatpush3.bf16.msra.mxu0 %v2351_v11 }
 0x2ae   : > { %2264 = vmatmul.mubr.msk.f32.vlgmr.msra.gmra.mrb[4].mxu1 %vm1421_vm3, %v1414_v37  ;;  %2271 = vmatmul.mubr.msk.f32.vlgmr.msra.gmra.mrb[8].mxu0 %vm1421_vm3, %v1414_v37 }
 0x2af   : > { %2275 = vmatprep.mubr.msk.f32.mxu1 %vm1585_vm6, %v1575_v53  ;;  %2280 = vmatprep.mubr.msk.f32.mxu0 %vm1585_vm6, %v1679_v57 }
 0x381   : > { %v1491_v54 = vpop.f32.mrb[4].mxu1  ;;  %v1566_v18 = vpop.f32.mrb[8].mxu0 }
 0x382   : > { %v1492_v26 = vadd.f32 %v1491_v54, %v1419_v62  ;;  %v1567_v41 = vadd.f32 %v1566_v18, %v1419_v62  ;;  %v2265_v8 = vpop.f32.mrb[5].mxu1  ;;  %v2272_v55 = vpop.f32.mrb[9].mxu0  ;;  %v1965_v62 = vld [vmem:[%s3626_s9] sm:$0xf] }
 0x383   : > { %1968 = vperm.xlu1 %2444, %v1965_v62  }
 0x384   : > { %v1495_v38 = vadd.f32 3.0, %v1492_v26  ;;  %v1570_v45 = vadd.f32 3.0, %v1567_v41 }
 0x386   : > { %v1496_v30 = vmax.f32 %v1495_v38, 0.0  ;;  %v1571_v42 = vmax.f32 %v1570_v45, 0.0 }
 0x388   : > { %v1497_v20 = vmin.f32 %v1496_v30, 6.0  ;;  %v1572_v35 = vmin.f32 %v1571_v42, 6.0 }
 0x38a   : > { %v1498_v36 = vmul.f32 0.16666667, %v1497_v20  ;;  %v1573_v23 = vmul.f32 0.16666667, %v1572_v35 }
 0x38c   : > { %v1499_v7 = vmul.f32 %v1498_v36, %v1492_v26  ;;  %v1574_v52 = vmul.f32 %v1573_v23, %v1567_v41 }
 0x38e   : > { %2273 = vmatprep.subr.mxu1 %v1499_v7  ;;  %2278 = vmatprep.subr.mxu0 %v1574_v52 }
 0x38f   : > { %2274 = vmatpush3.msra.mxu1 %v1499_v7  ;;  %2279 = vmatpush3.msra.mxu0 %v1574_v52 }
 0x390   : > { %2276 = vmatmul.mubr.msk.f32.vlgmr.msra.gmra.mrb[6].mxu1 %vm1585_vm6, %v1576_v47  ;;  %2281 = vmatmul.mubr.msk.f32.vlgmr.msra.gmra.mrb[10].mxu0 %vm1585_vm6, %v1680_v50 }
 0x391   : > { %1856 = vmatprep.mubr.f32.mxu1 %v3711_v24  ;;  %1947 = vmatprep.mubr.f32.mxu0 %v3711_v24 }
 0x392   : > { %2354 = vmatprep.subr.bf16.mxu1 %v2353_v4  ;;  %2358 = vmatprep.subr.bf16.mxu0 %v2357_v39  ;;  %v3712_v4 = vld [vmem:[#allocation11_spill] sm:$0xff] }
 0x393   : > { %2356 = vmatpush1.bf16.msra.mxu1 %v2355_v48  ;;  %2360 = vmatpush1.bf16.msra.mxu0 %v2359_v0 }
 0x463   : > { %v2277_v60 = vpop.f32.mrb[6].mxu1  ;;  %v2282_v63 = vpop.f32.mrb[10].mxu0 }
 0x464   : > { %v1664_v14 = vadd.f32 %v2277_v60, %v1583_v56  ;;  %v1658_v9 = vpop.f32.mrb[7].mxu1  ;;  %v1761_v1 = vpop.f32.mrb[11].mxu0  ;;  %v1767_v12 = vadd.f32 %v2282_v63, %v1687_v34 }
 0x465   : > { %v1659_v44 = vadd.f32 %v1658_v9, %v1579_v58  ;;  %v1762_v40 = vadd.f32 %v1761_v1, %v1683_v6 }
 0x466   : > { %v2154_v3 = vmul.f32 -1.442695, %v1664_v14  ;;  %v2158_v5 = vmul.f32 -1.442695, %v1767_v12 }
 0x467   : > { %v2153_v19 = vmul.f32 -1.442695, %v1659_v44  ;;  %v2157_v61 = vmul.f32 -1.442695, %v1762_v40 }
 0x468   : > { %2447 = vpow2.f32 %v2154_v3 }
 0x469   : > { %2449 = vpow2.f32 %v2153_v19 }
 0x46a   : > { %2451 = vpow2.f32 %v2157_v61 }
 0x46b   : > { %2453 = vpow2.f32 %v2158_v5 }
 0x472   : > { %v2448_v17 = vpop.eup %2447 }
 0x473   : > { %v2450_v27 = vpop.eup %2449  ;;  %v1674_v10 = vadd.f32 1.0, %v2448_v17 }
 0x474   : > { %v2452_v29 = vpop.eup %2451  ;;  %v1673_v2 = vadd.f32 1.0, %v2450_v27 }
 0x475   : > { %v2454_v59 = vpop.eup %2453  ;;  %v1776_v22 = vadd.f32 1.0, %v2452_v29 }
 0x476   : > { %2455 = vrcp.f32 %v1673_v2  ;;  %v1777_v32 = vadd.f32 1.0, %v2454_v59 }
 0x477   : > { %2457 = vrcp.f32 %v1776_v22 }
 0x478   : > { %2459 = vrcp.f32 %v1674_v10 }
 0x479   : > { %2461 = vrcp.f32 %v1777_v32 }
 0x480   : > { %v2456_v11 = vpop.eup %2455 }
 0x481   : > { %v2458_v37 = vpop.eup %2457  ;;  %2159 = vmatmul.mubr.msk.f32.vlgmr.msra.gmra.mrb[8].mxu1 %vm1421_vm3, %v2456_v11 }
 0x482   : > { %2161 = vmatmul.mubr.msk.f32.vlgmr.msra.gmra.mrb[12].mxu0 %vm1421_vm3, %v2458_v37  ;;  %1862 = vmatprep.mubr.f32.mxu1 %v3711_v24  ;;  %v2460_v53 = vpop.eup %2459 }
 0x483   : > { %1953 = vmatprep.mubr.f32.mxu0 %v3711_v24  ;;  %v2462_v57 = vpop.eup %2461 }
 0x485   : > { %2160 = vmatmul.mubr.msk.f32.gmra.mrb[10].mxu1 %vm1421_vm3, %v2460_v53 }
 0x486   : > { %2162 = vmatmul.mubr.msk.f32.gmra.mrb[14].mxu0 %vm1421_vm3, %v2462_v57  ;;  %2038 = vmatprep.mubr.f32.mxu1 %v3711_v24 }
 0x554   : > { %v1858_v54 = vpop.f32.mrb[8].mxu1 }
 0x555   : > { %v1869_v18 = vmul.f32 %v1858_v54, %v3465_v16  ;;  %v1949_v26 = vpop.f32.mrb[12].mxu0  ;;  %v1860_v41 = vpop.f32.mrb[9].mxu1 }
 0x556   : > { %v1870_v8 = vmul.f32 %v1860_v41, %v3467_v33  ;;  %v1951_v55 = vpop.f32.mrb[13].mxu0  ;;  %v1964_v33 = vld [vmem:[%s3625_s8] sm:$0xf] }
 0x557   : > { %v1960_v38 = vmul.f32 %v1949_v26, %v1869_v18 }
 0x558   : > { %v1961_v45 = vmul.f32 %v1951_v55, %v1870_v8  ;;  %v1864_v30 = vpop.f32.mrb[10].mxu1 }
 0x559   : > { %v1871_v42 = vmul.f32 %v1864_v30, %v3493_v31  ;;  %v1955_v24 = vpop.f32.mrb[14].mxu0  ;;  %v1866_v20 = vpop.f32.mrb[11].mxu1 }
 0x55a   : > { %v1872_v35 = vmul.f32 %v1866_v20, %v3495_v49  ;;  %v1957_v36 = vpop.f32.mrb[15].mxu0  ;;  %v1969_v31 = vpop.permute.xlu1 %1968 }
 0x55b   : > { %v1962_v23 = vmul.f32 %v1955_v24, %v1871_v42 }
 0x55c   : > { %v1963_v7 = vmul.f32 %v1957_v36, %v1872_v35 }
 0x55d   : > { %v2363_v16 = vpack.c.bf16 %v1962_v23, %v1960_v38 }
 0x55e   : > { %v2361_v52 = vpack.c.bf16 %v1963_v7, %v1961_v45 }
 0x560   : > { %2362 = vmatprep.subr.bf16.mxu1 %v2361_v52 }
 0x561   : > { %2364 = vmatpush1.bf16.msra.mxu1 %v2363_v16 }
 0x564   : > { %2163 = vmatmul.mubr.msk.f32.vlgmr.msra.gmra.mrb[12].mxu1 %vm1421_vm3, %v1964_v33 }
 0x637   : > { %v2040_v47 = vpop.f32.mrb[12].mxu1 }
 0x638   : > { %v2041_v49 = vadd.f32 %v2040_v47, %v1969_v31  ;;  %v2042_v50 = vpop.f32.mrb[13].mxu1 }
 0x639   : > { %v2043_v46 = vadd.f32 %v2042_v50, %v1969_v31 }
 0x63a   : > { %v2046_v15 = vadd.f32 %v2463_v51, %v2041_v49 }
 0x63b   : > { %v2047_v13 = vadd.f32 %v2043_v46, %v3712_v4 }
 0x63d   : > { %v2050_v28 = vcombine.low %v2046_v15, %v2047_v13 }
 0x63f   : > { %2052 = vst [vmem:[%s514_s20] sm:$0xff] %v2050_v28 }
 0x640   : > { %2477 = shalt.err (!%p2474_p3)
}
 0x641   : > { %s2478_s2 = scalar_lea.hbm %s3575_s28, 128  ;;  %s2482_s17 = scalar_lea.hbm %s3633_s16, 256 }
 0x642   : > { %p2479_p4 = scmp.ne.s32.totalorder %s3575_s28, %s2478_s2  ;;  %p2483_p9 = scmp.lt.u32.totalorder %s3575_s28, %s3633_s16 }
 0x643   : > { %p2484_p10 = scmp.lt.u32.totalorder %s2482_s17, %s2478_s2  ;;  %p2486_p12 = scmp.lt.u32.totalorder %s2478_s2, %s3575_s28 }
 0x644   : > { %p2480_p7 = pnand %p2479_p4, %p2672_p5 }
 0x645   : > { %p2485_p11 = por %p2484_p10, %p2483_p9 }
 0x646   : > { %p2481_p8 = pneg %p2480_p7 }
 0x647   : > { %p2487_p13 = por %p2486_p12, %p2485_p11 }
 0x649   : > { %p2488_p0 = pnand %p2487_p13, %p2481_p8 }
 0x64b   : > { %2491 = shalt.err (!%p2488_p0)
}
 0x64c   : > { %2365 = dma.vmem_to_hbm [thread:$0]  (%p2672_p5), %s3577_s30, 128, %s3575_s28, %s2054_s29  }
 0x64d PF: > { %s3713_s20 = sld [smem:[#allocation7_spill]]  ;;  %s3714_s1 = sld [smem:[#allocation5_spill]] }
 0x653   : > { %p2371_p1 = scmp.ge.s32.totalorder %s3713_s20, 2  ;;  %s2080_s26 = sand.u32 1, %s3714_s1  }
 0x654   : > { %s2081_s25 = scalar_lea.sflag [#allocation3], %s2080_s26 }
 0x655   : > { %p2368_p2 = pnand %p2371_p1, %p2676_p6 }
 0x657   : > { %2509 = dma.done.wait (!%p2368_p2), %s2081_s25, 128  }
 0x658   : > { %2511 = vsyncadd (!%p2368_p2), %s2081_s25, 4294967168  ;;  %s3716_s24 = sld [smem:[#allocation8_spill]]  ;;  %s3717_s3 = sld [smem:[#allocation6_spill]] }
 0x659   : > { %s3718_s23 = sld [smem:[#allocation9_spill]]  ;;  %s3719_s21 = smov %s2518_s22 }
 0x65e   : > { %p26_p3 = scmp.ge.s32.totalorder %s3716_s24, 4   ;;  %s3720_s22 = smov %s3717_s3 }
 0x660   :  { %28 = sbr.rel (!%p26_p3) target bundleno = 8 (0x8), region = 130 }
 0x667   :  { %2086 = vsyncpa [#allocation3], 1 }
 0x668   :  { %2088 = vsyncpa [#allocation3 + $0x1], 1 }

</bundles_post_ra>
